<compile_context>
chip_gen: v7x
topology: tpu7x:2x2x1
jax: 0.10.0
libtpu: 0.0.40
codegen_flags: <defaults>
</compile_context>

<pallas_src>
import functools
import numpy as np
import jax
import jax.numpy as jnp
from jax import lax
from jax.experimental import pallas as pl
from jax.experimental.pallas import tpu as pltpu


def residual_block_kernel(x_ref, halo_ref, w1_ref, b1_ref, w2_ref, b2_ref,
                          o_ref, *, L, K, C, T_tile, HL, H, T_total,
                          dilations, use_bf16):
    t_idx = pl.program_id(1)
    W0 = HL + T_tile + H
    win_start = t_idx * T_tile - HL            # global time of window col 0

    halo = halo_ref[...].astype(jnp.float32)   # (C, HL + H)
    main = x_ref[...].astype(jnp.float32)      # (C, T_tile)
    # Lane-aligned assembly: left piece is HL (multiple of 128) wide, so main
    # and the right halo land on 128-lane boundaries.
    window = jnp.concatenate([halo[:, :HL], main, halo[:, HL:]], axis=1)

    # Hoisted global-time row; per-conv boundary masking only slices it.
    # (Interior tiles pay a few cheap selects; skipping them is a VPU-level
    #  micro-opt once HBM is no longer binding.)
    g = win_start + lax.broadcasted_iota(jnp.int32, (1, W0), 1)
    mm = jnp.bfloat16 if use_bf16 else jnp.float32

    def masked_act(v, off, width):
        # leaky_relu(0.1) + emulation of each Conv1d's zero padding at the
        # true sequence boundaries (also zeroes garbage in the ragged tail).
        gs = g[:, off:off + width]
        return jnp.where((gs >= 0) & (gs < T_total),
                         jnp.where(v >= 0, v, 0.1 * v), 0.0)

    def conv(a, w_l, bias, dil, width_in):
        # "same" dilated conv as K accumulating MXU dots on shifted views.
        pad = dil * (K - 1) // 2
        width_out = width_in - 2 * pad
        a = a.astype(mm)
        acc = jnp.dot(w_l[0], a[:, :width_out],
                      preferred_element_type=jnp.float32)
        for k in range(1, K):
            acc = acc + jnp.dot(w_l[k], a[:, k * dil:k * dil + width_out],
                                preferred_element_type=jnp.float32)
        return acc + bias                       # (C, width_out), f32

    # TODO(synk): on v6e/v7x the activation chain could run in bf16 (keep the
    # matmul accumulator / residual carry in f32); left in f32 for v5e safety.
    cur, off, width = window, 0, W0
    for l in range(L):                          # L is small -> unrolled
        d = dilations[l]
        p1, p2 = d * (K - 1) // 2, (K - 1) // 2
        layer_in = cur

        y = conv(masked_act(cur, off, width), w1_ref[l], b1_ref[l], d, width)
        off, width = off + p1, width - 2 * p1

        y = conv(masked_act(y, off, width), w2_ref[l], b2_ref[l], 1, width)
        off, width = off + p2, width - 2 * p2

        cur = y + layer_in[:, p1 + p2:p1 + p2 + width]   # residual (f32)

    # cur columns = window cols [H, HL + T_tile); keep [HL, HL + T_tile),
    # i.e. global times [t_idx*T_tile, t_idx*T_tile + T_tile).
    o_ref[...] = cur[:, HL - H:HL - H + T_tile].astype(o_ref.dtype)


def _halo_windows(x, t_tile, NT, HL, H):
    """(B, NT, C, HL + H) per-tile context: [zeros(HL-H) | left H | right H],
    zero-filled outside [0, T).  Reads only ~2H columns of x per tile."""
    B, C, T = x.shape

    def take(s, e):                              # x[:, :, s:e] with zero fill
        s0, e0 = max(s, 0), min(e, T)
        if e0 <= s0:
            return jnp.zeros((B, C, e - s), x.dtype)
        parts = []
        if s0 > s:
            parts.append(jnp.zeros((B, C, s0 - s), x.dtype))
        parts.append(lax.slice_in_dim(x, s0, e0, axis=2))
        if e > e0:
            parts.append(jnp.zeros((B, C, e - e0), x.dtype))
        return parts[0] if len(parts) == 1 else jnp.concatenate(parts, axis=2)

    zeros_pad = jnp.zeros((B, C, HL - H), x.dtype)
    tiles = []
    for i in range(NT):                          # NT is small (big t_tile)
        left = take(i * t_tile - H, i * t_tile)
        right = take((i + 1) * t_tile, (i + 1) * t_tile + H)
        pieces = ([zeros_pad] if HL > H else []) + [left, right]
        tiles.append(jnp.concatenate(pieces, axis=2))
    return jnp.stack(tiles, axis=1)              # (B, NT, C, HL + H)


def residual_block(x, w1, b1, w2, b2, dilations, kernel_size, *,
                   t_tile=None, use_bf16=False):
    """x: (B, C, T); w1/w2: (L, C, C, K) Conv1d weights; b1/b2: (L, C[,1])."""
    B, C, T = x.shape
    L = len(dilations)
    K = kernel_size
    # TODO(synk): even kernel_size (asymmetric PyTorch padding) and K == 1
    # are not supported by this halo formulation.
    assert K % 2 == 1 and K >= 3, "only odd kernel_size >= 3 supported"

    # Dependency radius of one output column through all 2L "same" convs.
    H = sum(d * (K - 1) // 2 + (K - 1) // 2 for d in dilations)
    HL = -(-H // 128) * 128            # left halo rounded up: aligned concat

    itemsize = jnp.dtype(x.dtype).itemsize
    w_itemsize = 2 if use_bf16 else 4

    def footprint(tt):                 # rough per-step VMEM estimate (bytes)
        w0 = HL + tt + H
        return (2 * C * tt * itemsize              # double-buffered x block
                + 2 * C * (HL + H) * itemsize      # double-buffered halo block
                + 2 * C * tt * itemsize            # double-buffered out block
                + 8 * C * w0 * 4                   # live f32 intermediates
                + 2 * L * K * C * C * w_itemsize   # resident weights
                + 2 * L * C * 4)                   # resident biases

    if t_tile is None:
        # Large lane-dense tiles amortize the ~0.35us/step grid overhead; keep
        # the working set under v5e's 16 MiB scoped-VMEM default w/ headroom.
        t_tile = min(4096, max(128, -(-T // 128) * 128))
        while t_tile > 128 and footprint(t_tile) > 12 * 2 ** 20:
            t_tile -= 128
    assert t_tile % 128 == 0 and t_tile >= 128
    NT = pl.cdiv(T, t_tile)

    halos = _halo_windows(x, t_tile, NT, HL, H)    # (B, NT, C, HL + H)

    f32 = jnp.float32
    mm_dtype = jnp.bfloat16 if use_bf16 else f32

    def prep_w(w):   # (L, C_out, C_in, K) -> (L, K, C_out, C_in)
        return jnp.transpose(w, (0, 3, 1, 2)).astype(mm_dtype)

    def prep_b(b):
        return jnp.reshape(b, (L, C, 1)).astype(f32)

    # TODO(synk): for production channel counts (C ~ 512) stream the weights
    # per layer via an L block dim instead of keeping them fully resident.
    wf1, wf2 = prep_w(w1), prep_w(w2)
    b1p, b2p = prep_b(b1), prep_b(b2)

    kernel = functools.partial(
        residual_block_kernel, L=L, K=K, C=C, T_tile=t_tile, HL=HL, H=H,
        T_total=T, dilations=tuple(dilations), use_bf16=use_bf16)

    def resident(a):   # constant index_map -> stays in VMEM across the grid
        return pl.BlockSpec(a.shape, lambda b, t, _n=a.ndim: (0,) * _n)

    # Advisory cost hint: firmly HBM-bound at small C (FLOPs/byte << 1).
    flops = 4 * L * K * C * C * B * T
    bytes_accessed = int(2 * B * C * T * itemsize + halos.size * itemsize
                         + (wf1.size + wf2.size) * w_itemsize
                         + (b1p.size + b2p.size) * 4)

    fp = footprint(t_tile)
    vmem_limit = int(min(100 * 2 ** 20, 2 * fp)) if fp > 12 * 2 ** 20 else None

    out = pl.pallas_call(
        kernel,
        out_shape=jax.ShapeDtypeStruct((B, C, T), x.dtype),
        grid=(B, NT),
        in_specs=[
            # Main input: lane-dense (C, t_tile) blocks straight from x; the
            # ragged last tile's out-of-range columns are masked in-kernel.
            pl.BlockSpec((pl.Squeezed(), C, t_tile), lambda b, t: (b, 0, t)),
            # Tiny per-tile halo context.
            pl.BlockSpec((pl.Squeezed(), pl.Squeezed(), C, HL + H),
                         lambda b, t: (b, t, 0, 0)),
            resident(wf1), resident(b1p), resident(wf2), resident(b2p),
        ],
        # Direct (C, t_tile) writes into (B, C, T): no padded channels, no
        # trailing slice; Pallas drops writes past the ragged tail.
        out_specs=pl.BlockSpec((pl.Squeezed(), C, t_tile),
                               lambda b, t: (b, 0, t)),
        compiler_params=pltpu.CompilerParams(
            dimension_semantics=("parallel", "parallel"),
            vmem_limit_bytes=vmem_limit),
        cost_estimate=pl.CostEstimate(flops=flops, transcendentals=0,
                                      bytes_accessed=bytes_accessed),
    )(x, halos, wf1, b1p, wf2, b2p)

    return out


def reference(x, w1, b1, w2, b2, dilations, K):
    """Pure-JAX reference matching the PyTorch forward exactly."""
    def lrelu(v):
        return jnp.where(v >= 0, v, 0.1 * v)
    dn = ('NCH', 'OIH', 'NCH')
    for i, d in enumerate(dilations):
        pad = d * (K - 1) // 2
        xt = lrelu(x)
        xt = lax.conv_general_dilated(xt, w1[i], (1,), [(pad, pad)],
                                      rhs_dilation=(d,), dimension_numbers=dn)
        xt = xt + b1[i][None]
        xt = lrelu(xt)
        pad1 = (K - 1) // 2
        xt = lax.conv_general_dilated(xt, w2[i], (1,), [(pad1, pad1)],
                                      rhs_dilation=(1,), dimension_numbers=dn)
        xt = xt + b2[i][None]
        x = xt + x
    return x


if __name__ == "__main__":
    # ResidualBlock(channels=4, kernel_size=3, dilation_sizes=[1, 3, 5])
    B, C, T = 2, 4, 16
    K = 3
    dilations = [1, 3, 5]
    L = len(dilations)

    key = jax.random.PRNGKey(0)
    k1, k2, kx = jax.random.split(key, 3)
    # init_weights: normal(0, 0.01) weights, zero biases
    w1 = (0.01 * jax.random.normal(k1, (L, C, C, K))).astype(jnp.float32)
    w2 = (0.01 * jax.random.normal(k2, (L, C, C, K))).astype(jnp.float32)
    b1 = jnp.zeros((L, C, 1), jnp.float32)
    b2 = jnp.zeros((L, C, 1), jnp.float32)
    x = jax.random.normal(kx, (B, C, T), dtype=jnp.float32)

    ref = reference(x, w1, b1, w2, b2, dilations, K)

    # f32 matmul path (exact semantics).
    out = jax.block_until_ready(residual_block(x, w1, b1, w2, b2, dilations, K))
    np.testing.assert_allclose(np.asarray(out), np.asarray(ref),
                               rtol=1e-5, atol=1e-5)

    # Multi-tile path: T spans several lane-dense tiles with a ragged tail
    # (exercises halo side-array, interior tiles and clipped final writes).
    x2 = jax.random.normal(jax.random.PRNGKey(1), (1, C, 300), dtype=jnp.float32)
    ref2 = reference(x2, w1, b1, w2, b2, dilations, K)
    out2 = jax.block_until_ready(
        residual_block(x2, w1, b1, w2, b2, dilations, K, t_tile=128))
    np.testing.assert_allclose(np.asarray(out2), np.asarray(ref2),
                               rtol=1e-5, atol=1e-5)

    # bf16 MXU path (weights + matmul operands bf16, f32 accumulation/carry).
    out_bf = jax.block_until_ready(
        residual_block(x, w1, b1, w2, b2, dilations, K, use_bf16=True))
    np.testing.assert_allclose(np.asarray(out_bf), np.asarray(ref),
                               rtol=1e-2, atol=1e-2)

    print("KERNEL_OK")
</pallas_src>

<mosaic_0001>
module attributes {stable_mosaic.version = 11 : i64} {
  func.func @residual_block_kernel(%arg0: i32, %arg1: i32, %arg2: memref<1x4x128xf32, #tpu.memory_space<vmem>>, %arg3: memref<1x1x4x140xf32, #tpu.memory_space<vmem>>, %arg4: memref<3x3x4x4xf32, #tpu.memory_space<vmem>>, %arg5: memref<3x4x1xf32, #tpu.memory_space<vmem>>, %arg6: memref<3x3x4x4xf32, #tpu.memory_space<vmem>>, %arg7: memref<3x4x1xf32, #tpu.memory_space<vmem>>, %arg8: memref<1x4x128xf32, #tpu.memory_space<vmem>>) attributes {dimension_semantics = [#tpu.dimension_semantics<parallel>, #tpu.dimension_semantics<parallel>], iteration_bounds = array<i64: 2, 1>, scalar_prefetch = 0 : i64, scratch_operands = 0 : i64, tpu.core_type = #tpu.core_type<tc>, window_params = [{transform_indices = @transform_0, window_bounds = array<i64: 1, 4, 128>}, {transform_indices = @transform_1, window_bounds = array<i64: 1, 1, 4, 140>}, {pipeline_mode = #tpu.pipeline_mode<synchronous>, transform_indices = @transform_2, window_bounds = array<i64: 3, 3, 4, 4>}, {pipeline_mode = #tpu.pipeline_mode<synchronous>, transform_indices = @transform_3, window_bounds = array<i64: 3, 4, 1>}, {pipeline_mode = #tpu.pipeline_mode<synchronous>, transform_indices = @transform_4, window_bounds = array<i64: 3, 3, 4, 4>}, {pipeline_mode = #tpu.pipeline_mode<synchronous>, transform_indices = @transform_5, window_bounds = array<i64: 3, 4, 1>}, {transform_indices = @transform_6, window_bounds = array<i64: 1, 4, 128>}]} {
    %c128_i32 = arith.constant 128 : i32
    %0 = arith.muli %arg1, %c128_i32 : i32
    %c128_i32_0 = arith.constant 128 : i32
    %1 = arith.subi %0, %c128_i32_0 : i32
    %c0 = arith.constant 0 : index
    %c0_1 = arith.constant 0 : index
    %c0_2 = arith.constant 0 : index
    %c0_3 = arith.constant 0 : index
    %2 = vector.load %arg3[%c0, %c0_1, %c0_2, %c0_3] : memref<1x1x4x140xf32, #tpu.memory_space<vmem>>, vector<1x1x4x140xf32>
    %3 = vector.shape_cast %2 : vector<1x1x4x140xf32> to vector<4x140xf32>
    %c0_4 = arith.constant 0 : index
    %c0_5 = arith.constant 0 : index
    %c0_6 = arith.constant 0 : index
    %4 = vector.load %arg2[%c0_4, %c0_5, %c0_6] : memref<1x4x128xf32, #tpu.memory_space<vmem>>, vector<1x4x128xf32>
    %5 = vector.shape_cast %4 : vector<1x4x128xf32> to vector<4x128xf32>
    %6 = vector.extract_strided_slice %3 {offsets = [0, 0], sizes = [4, 128], strides = [1, 1]} : vector<4x140xf32> to vector<4x128xf32>
    %7 = vector.extract_strided_slice %3 {offsets = [0, 128], sizes = [4, 12], strides = [1, 1]} : vector<4x140xf32> to vector<4x12xf32>
    %8 = tpu.concatenate %6, %5, %7 in 1 : vector<4x128xf32>, vector<4x128xf32>, vector<4x12xf32> -> vector<4x268xf32>
    %9 = tpu.iota {dimensions = array<i32: 1>} : vector<1x268xi32>
    %10 = vector.broadcast %1 : i32 to vector<1x268xi32>
    %11 = arith.addi %10, %9 : vector<1x268xi32>
    %c0_i32 = arith.constant 0 : i32
    %12 = vector.broadcast %c0_i32 : i32 to vector<1x268xi32>
    %13 = arith.cmpi sge, %11, %12 : vector<1x268xi32>
    %c16_i32 = arith.constant 16 : i32
    %14 = vector.broadcast %c16_i32 : i32 to vector<1x268xi32>
    %15 = arith.cmpi slt, %11, %14 : vector<1x268xi32>
    %16 = arith.andi %13, %15 : vector<1x268xi1>
    %cst = arith.constant 0.000000e+00 : f32
    %17 = vector.broadcast %cst : f32 to vector<4x268xf32>
    %18 = arith.cmpf oge, %8, %17 : vector<4x268xf32>
    %cst_7 = arith.constant 1.000000e-01 : f32
    %19 = vector.broadcast %cst_7 : f32 to vector<4x268xf32>
    %20 = arith.mulf %19, %8 : vector<4x268xf32>
    %21 = arith.select %18, %8, %20 : vector<4x268xi1>, vector<4x268xf32>
    %cst_8 = arith.constant 0.000000e+00 : f32
    %22 = vector.shape_cast %16 : vector<1x268xi1> to vector<1x268xi1>
    %23 = vector.broadcast %22 : vector<1x268xi1> to vector<4x268xi1>
    %24 = vector.broadcast %cst_8 : f32 to vector<4x268xf32>
    %25 = arith.select %23, %21, %24 : vector<4x268xi1>, vector<4x268xf32>
    %c0_9 = arith.constant 0 : index
    %c0_10 = arith.constant 0 : index
    %c0_11 = arith.constant 0 : index
    %c0_12 = arith.constant 0 : index
    %26 = vector.load %arg4[%c0_9, %c0_10, %c0_11, %c0_12] : memref<3x3x4x4xf32, #tpu.memory_space<vmem>>, vector<1x3x4x4xf32>
    %27 = vector.shape_cast %26 : vector<1x3x4x4xf32> to vector<3x4x4xf32>
    %c0_13 = arith.constant 0 : index
    %c0_14 = arith.constant 0 : index
    %c0_15 = arith.constant 0 : index
    %28 = vector.load %arg5[%c0_13, %c0_14, %c0_15] : memref<3x4x1xf32, #tpu.memory_space<vmem>>, vector<1x4x1xf32>
    %29 = vector.shape_cast %28 : vector<1x4x1xf32> to vector<4x1xf32>
    %30 = vector.extract_strided_slice %27 {offsets = [0, 0, 0], sizes = [1, 4, 4], strides = [1, 1, 1]} : vector<3x4x4xf32> to vector<1x4x4xf32>
    %31 = vector.shape_cast %30 : vector<1x4x4xf32> to vector<4x4xf32>
    %32 = vector.extract_strided_slice %25 {offsets = [0, 0], sizes = [4, 266], strides = [1, 1]} : vector<4x268xf32> to vector<4x266xf32>
    %cst_16 = arith.constant dense<0.000000e+00> : vector<4x266xf32>
    %33 = tpu.matmul %31, %32, %cst_16 {dimension_numbers = #tpu.dot_dimension_numbers<[1], [0], [0], [1], [0, 0, 1, 1], [], []>} : vector<4x4xf32>, vector<4x266xf32>, vector<4x266xf32> -> vector<4x266xf32>
    %34 = vector.extract_strided_slice %27 {offsets = [1, 0, 0], sizes = [1, 4, 4], strides = [1, 1, 1]} : vector<3x4x4xf32> to vector<1x4x4xf32>
    %35 = vector.shape_cast %34 : vector<1x4x4xf32> to vector<4x4xf32>
    %36 = vector.extract_strided_slice %25 {offsets = [0, 1], sizes = [4, 266], strides = [1, 1]} : vector<4x268xf32> to vector<4x266xf32>
    %cst_17 = arith.constant dense<0.000000e+00> : vector<4x266xf32>
    %37 = tpu.matmul %35, %36, %cst_17 {dimension_numbers = #tpu.dot_dimension_numbers<[1], [0], [0], [1], [0, 0, 1, 1], [], []>} : vector<4x4xf32>, vector<4x266xf32>, vector<4x266xf32> -> vector<4x266xf32>
    %38 = arith.addf %33, %37 : vector<4x266xf32>
    %39 = vector.extract_strided_slice %27 {offsets = [2, 0, 0], sizes = [1, 4, 4], strides = [1, 1, 1]} : vector<3x4x4xf32> to vector<1x4x4xf32>
    %40 = vector.shape_cast %39 : vector<1x4x4xf32> to vector<4x4xf32>
    %41 = vector.extract_strided_slice %25 {offsets = [0, 2], sizes = [4, 266], strides = [1, 1]} : vector<4x268xf32> to vector<4x266xf32>
    %cst_18 = arith.constant dense<0.000000e+00> : vector<4x266xf32>
    %42 = tpu.matmul %40, %41, %cst_18 {dimension_numbers = #tpu.dot_dimension_numbers<[1], [0], [0], [1], [0, 0, 1, 1], [], []>} : vector<4x4xf32>, vector<4x266xf32>, vector<4x266xf32> -> vector<4x266xf32>
    %43 = arith.addf %38, %42 : vector<4x266xf32>
    %44 = vector.broadcast %29 : vector<4x1xf32> to vector<4x266xf32>
    %45 = arith.addf %43, %44 : vector<4x266xf32>
    %46 = vector.extract_strided_slice %11 {offsets = [0, 1], sizes = [1, 266], strides = [1, 1]} : vector<1x268xi32> to vector<1x266xi32>
    %c0_i32_19 = arith.constant 0 : i32
    %47 = vector.broadcast %c0_i32_19 : i32 to vector<1x266xi32>
    %48 = arith.cmpi sge, %46, %47 : vector<1x266xi32>
    %c16_i32_20 = arith.constant 16 : i32
    %49 = vector.broadcast %c16_i32_20 : i32 to vector<1x266xi32>
    %50 = arith.cmpi slt, %46, %49 : vector<1x266xi32>
    %51 = arith.andi %48, %50 : vector<1x266xi1>
    %cst_21 = arith.constant 0.000000e+00 : f32
    %52 = vector.broadcast %cst_21 : f32 to vector<4x266xf32>
    %53 = arith.cmpf oge, %45, %52 : vector<4x266xf32>
    %cst_22 = arith.constant 1.000000e-01 : f32
    %54 = vector.broadcast %cst_22 : f32 to vector<4x266xf32>
    %55 = arith.mulf %54, %45 : vector<4x266xf32>
    %56 = arith.select %53, %45, %55 : vector<4x266xi1>, vector<4x266xf32>
    %cst_23 = arith.constant 0.000000e+00 : f32
    %57 = vector.shape_cast %51 : vector<1x266xi1> to vector<1x266xi1>
    %58 = vector.broadcast %57 : vector<1x266xi1> to vector<4x266xi1>
    %59 = vector.broadcast %cst_23 : f32 to vector<4x266xf32>
    %60 = arith.select %58, %56, %59 : vector<4x266xi1>, vector<4x266xf32>
    %c0_24 = arith.constant 0 : index
    %c0_25 = arith.constant 0 : index
    %c0_26 = arith.constant 0 : index
    %c0_27 = arith.constant 0 : index
    %61 = vector.load %arg6[%c0_24, %c0_25, %c0_26, %c0_27] : memref<3x3x4x4xf32, #tpu.memory_space<vmem>>, vector<1x3x4x4xf32>
    %62 = vector.shape_cast %61 : vector<1x3x4x4xf32> to vector<3x4x4xf32>
    %c0_28 = arith.constant 0 : index
    %c0_29 = arith.constant 0 : index
    %c0_30 = arith.constant 0 : index
    %63 = vector.load %arg7[%c0_28, %c0_29, %c0_30] : memref<3x4x1xf32, #tpu.memory_space<vmem>>, vector<1x4x1xf32>
    %64 = vector.shape_cast %63 : vector<1x4x1xf32> to vector<4x1xf32>
    %65 = vector.extract_strided_slice %62 {offsets = [0, 0, 0], sizes = [1, 4, 4], strides = [1, 1, 1]} : vector<3x4x4xf32> to vector<1x4x4xf32>
    %66 = vector.shape_cast %65 : vector<1x4x4xf32> to vector<4x4xf32>
    %67 = vector.extract_strided_slice %60 {offsets = [0, 0], sizes = [4, 264], strides = [1, 1]} : vector<4x266xf32> to vector<4x264xf32>
    %cst_31 = arith.constant dense<0.000000e+00> : vector<4x264xf32>
    %68 = tpu.matmul %66, %67, %cst_31 {dimension_numbers = #tpu.dot_dimension_numbers<[1], [0], [0], [1], [0, 0, 1, 1], [], []>} : vector<4x4xf32>, vector<4x264xf32>, vector<4x264xf32> -> vector<4x264xf32>
    %69 = vector.extract_strided_slice %62 {offsets = [1, 0, 0], sizes = [1, 4, 4], strides = [1, 1, 1]} : vector<3x4x4xf32> to vector<1x4x4xf32>
    %70 = vector.shape_cast %69 : vector<1x4x4xf32> to vector<4x4xf32>
    %71 = vector.extract_strided_slice %60 {offsets = [0, 1], sizes = [4, 264], strides = [1, 1]} : vector<4x266xf32> to vector<4x264xf32>
    %cst_32 = arith.constant dense<0.000000e+00> : vector<4x264xf32>
    %72 = tpu.matmul %70, %71, %cst_32 {dimension_numbers = #tpu.dot_dimension_numbers<[1], [0], [0], [1], [0, 0, 1, 1], [], []>} : vector<4x4xf32>, vector<4x264xf32>, vector<4x264xf32> -> vector<4x264xf32>
    %73 = arith.addf %68, %72 : vector<4x264xf32>
    %74 = vector.extract_strided_slice %62 {offsets = [2, 0, 0], sizes = [1, 4, 4], strides = [1, 1, 1]} : vector<3x4x4xf32> to vector<1x4x4xf32>
    %75 = vector.shape_cast %74 : vector<1x4x4xf32> to vector<4x4xf32>
    %76 = vector.extract_strided_slice %60 {offsets = [0, 2], sizes = [4, 264], strides = [1, 1]} : vector<4x266xf32> to vector<4x264xf32>
    %cst_33 = arith.constant dense<0.000000e+00> : vector<4x264xf32>
    %77 = tpu.matmul %75, %76, %cst_33 {dimension_numbers = #tpu.dot_dimension_numbers<[1], [0], [0], [1], [0, 0, 1, 1], [], []>} : vector<4x4xf32>, vector<4x264xf32>, vector<4x264xf32> -> vector<4x264xf32>
    %78 = arith.addf %73, %77 : vector<4x264xf32>
    %79 = vector.broadcast %64 : vector<4x1xf32> to vector<4x264xf32>
    %80 = arith.addf %78, %79 : vector<4x264xf32>
    %81 = vector.extract_strided_slice %8 {offsets = [0, 2], sizes = [4, 264], strides = [1, 1]} : vector<4x268xf32> to vector<4x264xf32>
    %82 = arith.addf %80, %81 : vector<4x264xf32>
    %83 = vector.extract_strided_slice %11 {offsets = [0, 2], sizes = [1, 264], strides = [1, 1]} : vector<1x268xi32> to vector<1x264xi32>
    %c0_i32_34 = arith.constant 0 : i32
    %84 = vector.broadcast %c0_i32_34 : i32 to vector<1x264xi32>
    %85 = arith.cmpi sge, %83, %84 : vector<1x264xi32>
    %c16_i32_35 = arith.constant 16 : i32
    %86 = vector.broadcast %c16_i32_35 : i32 to vector<1x264xi32>
    %87 = arith.cmpi slt, %83, %86 : vector<1x264xi32>
    %88 = arith.andi %85, %87 : vector<1x264xi1>
    %cst_36 = arith.constant 0.000000e+00 : f32
    %89 = vector.broadcast %cst_36 : f32 to vector<4x264xf32>
    %90 = arith.cmpf oge, %82, %89 : vector<4x264xf32>
    %cst_37 = arith.constant 1.000000e-01 : f32
    %91 = vector.broadcast %cst_37 : f32 to vector<4x264xf32>
    %92 = arith.mulf %91, %82 : vector<4x264xf32>
    %93 = arith.select %90, %82, %92 : vector<4x264xi1>, vector<4x264xf32>
    %cst_38 = arith.constant 0.000000e+00 : f32
    %94 = vector.shape_cast %88 : vector<1x264xi1> to vector<1x264xi1>
    %95 = vector.broadcast %94 : vector<1x264xi1> to vector<4x264xi1>
    %96 = vector.broadcast %cst_38 : f32 to vector<4x264xf32>
    %97 = arith.select %95, %93, %96 : vector<4x264xi1>, vector<4x264xf32>
    %c1 = arith.constant 1 : index
    %c0_39 = arith.constant 0 : index
    %c0_40 = arith.constant 0 : index
    %c0_41 = arith.constant 0 : index
    %98 = vector.load %arg4[%c1, %c0_39, %c0_40, %c0_41] : memref<3x3x4x4xf32, #tpu.memory_space<vmem>>, vector<1x3x4x4xf32>
    %99 = vector.shape_cast %98 : vector<1x3x4x4xf32> to vector<3x4x4xf32>
    %c1_42 = arith.constant 1 : index
    %c0_43 = arith.constant 0 : index
    %c0_44 = arith.constant 0 : index
    %100 = vector.load %arg5[%c1_42, %c0_43, %c0_44] : memref<3x4x1xf32, #tpu.memory_space<vmem>>, vector<1x4x1xf32>
    %101 = vector.shape_cast %100 : vector<1x4x1xf32> to vector<4x1xf32>
    %102 = vector.extract_strided_slice %99 {offsets = [0, 0, 0], sizes = [1, 4, 4], strides = [1, 1, 1]} : vector<3x4x4xf32> to vector<1x4x4xf32>
    %103 = vector.shape_cast %102 : vector<1x4x4xf32> to vector<4x4xf32>
    %104 = vector.extract_strided_slice %97 {offsets = [0, 0], sizes = [4, 258], strides = [1, 1]} : vector<4x264xf32> to vector<4x258xf32>
    %cst_45 = arith.constant dense<0.000000e+00> : vector<4x258xf32>
    %105 = tpu.matmul %103, %104, %cst_45 {dimension_numbers = #tpu.dot_dimension_numbers<[1], [0], [0], [1], [0, 0, 1, 1], [], []>} : vector<4x4xf32>, vector<4x258xf32>, vector<4x258xf32> -> vector<4x258xf32>
    %106 = vector.extract_strided_slice %99 {offsets = [1, 0, 0], sizes = [1, 4, 4], strides = [1, 1, 1]} : vector<3x4x4xf32> to vector<1x4x4xf32>
    %107 = vector.shape_cast %106 : vector<1x4x4xf32> to vector<4x4xf32>
    %108 = vector.extract_strided_slice %97 {offsets = [0, 3], sizes = [4, 258], strides = [1, 1]} : vector<4x264xf32> to vector<4x258xf32>
    %cst_46 = arith.constant dense<0.000000e+00> : vector<4x258xf32>
    %109 = tpu.matmul %107, %108, %cst_46 {dimension_numbers = #tpu.dot_dimension_numbers<[1], [0], [0], [1], [0, 0, 1, 1], [], []>} : vector<4x4xf32>, vector<4x258xf32>, vector<4x258xf32> -> vector<4x258xf32>
    %110 = arith.addf %105, %109 : vector<4x258xf32>
    %111 = vector.extract_strided_slice %99 {offsets = [2, 0, 0], sizes = [1, 4, 4], strides = [1, 1, 1]} : vector<3x4x4xf32> to vector<1x4x4xf32>
    %112 = vector.shape_cast %111 : vector<1x4x4xf32> to vector<4x4xf32>
    %113 = vector.extract_strided_slice %97 {offsets = [0, 6], sizes = [4, 258], strides = [1, 1]} : vector<4x264xf32> to vector<4x258xf32>
    %cst_47 = arith.constant dense<0.000000e+00> : vector<4x258xf32>
    %114 = tpu.matmul %112, %113, %cst_47 {dimension_numbers = #tpu.dot_dimension_numbers<[1], [0], [0], [1], [0, 0, 1, 1], [], []>} : vector<4x4xf32>, vector<4x258xf32>, vector<4x258xf32> -> vector<4x258xf32>
    %115 = arith.addf %110, %114 : vector<4x258xf32>
    %116 = vector.broadcast %101 : vector<4x1xf32> to vector<4x258xf32>
    %117 = arith.addf %115, %116 : vector<4x258xf32>
    %118 = vector.extract_strided_slice %11 {offsets = [0, 5], sizes = [1, 258], strides = [1, 1]} : vector<1x268xi32> to vector<1x258xi32>
    %c0_i32_48 = arith.constant 0 : i32
    %119 = vector.broadcast %c0_i32_48 : i32 to vector<1x258xi32>
    %120 = arith.cmpi sge, %118, %119 : vector<1x258xi32>
    %c16_i32_49 = arith.constant 16 : i32
    %121 = vector.broadcast %c16_i32_49 : i32 to vector<1x258xi32>
    %122 = arith.cmpi slt, %118, %121 : vector<1x258xi32>
    %123 = arith.andi %120, %122 : vector<1x258xi1>
    %cst_50 = arith.constant 0.000000e+00 : f32
    %124 = vector.broadcast %cst_50 : f32 to vector<4x258xf32>
    %125 = arith.cmpf oge, %117, %124 : vector<4x258xf32>
    %cst_51 = arith.constant 1.000000e-01 : f32
    %126 = vector.broadcast %cst_51 : f32 to vector<4x258xf32>
    %127 = arith.mulf %126, %117 : vector<4x258xf32>
    %128 = arith.select %125, %117, %127 : vector<4x258xi1>, vector<4x258xf32>
    %cst_52 = arith.constant 0.000000e+00 : f32
    %129 = vector.shape_cast %123 : vector<1x258xi1> to vector<1x258xi1>
    %130 = vector.broadcast %129 : vector<1x258xi1> to vector<4x258xi1>
    %131 = vector.broadcast %cst_52 : f32 to vector<4x258xf32>
    %132 = arith.select %130, %128, %131 : vector<4x258xi1>, vector<4x258xf32>
    %c1_53 = arith.constant 1 : index
    %c0_54 = arith.constant 0 : index
    %c0_55 = arith.constant 0 : index
    %c0_56 = arith.constant 0 : index
    %133 = vector.load %arg6[%c1_53, %c0_54, %c0_55, %c0_56] : memref<3x3x4x4xf32, #tpu.memory_space<vmem>>, vector<1x3x4x4xf32>
    %134 = vector.shape_cast %133 : vector<1x3x4x4xf32> to vector<3x4x4xf32>
    %c1_57 = arith.constant 1 : index
    %c0_58 = arith.constant 0 : index
    %c0_59 = arith.constant 0 : index
    %135 = vector.load %arg7[%c1_57, %c0_58, %c0_59] : memref<3x4x1xf32, #tpu.memory_space<vmem>>, vector<1x4x1xf32>
    %136 = vector.shape_cast %135 : vector<1x4x1xf32> to vector<4x1xf32>
    %137 = vector.extract_strided_slice %134 {offsets = [0, 0, 0], sizes = [1, 4, 4], strides = [1, 1, 1]} : vector<3x4x4xf32> to vector<1x4x4xf32>
    %138 = vector.shape_cast %137 : vector<1x4x4xf32> to vector<4x4xf32>
    %139 = vector.extract_strided_slice %132 {offsets = [0, 0], sizes = [4, 256], strides = [1, 1]} : vector<4x258xf32> to vector<4x256xf32>
    %cst_60 = arith.constant dense<0.000000e+00> : vector<4x256xf32>
    %140 = tpu.matmul %138, %139, %cst_60 {dimension_numbers = #tpu.dot_dimension_numbers<[1], [0], [0], [1], [0, 0, 1, 1], [], []>} : vector<4x4xf32>, vector<4x256xf32>, vector<4x256xf32> -> vector<4x256xf32>
    %141 = vector.extract_strided_slice %134 {offsets = [1, 0, 0], sizes = [1, 4, 4], strides = [1, 1, 1]} : vector<3x4x4xf32> to vector<1x4x4xf32>
    %142 = vector.shape_cast %141 : vector<1x4x4xf32> to vector<4x4xf32>
    %143 = vector.extract_strided_slice %132 {offsets = [0, 1], sizes = [4, 256], strides = [1, 1]} : vector<4x258xf32> to vector<4x256xf32>
    %cst_61 = arith.constant dense<0.000000e+00> : vector<4x256xf32>
    %144 = tpu.matmul %142, %143, %cst_61 {dimension_numbers = #tpu.dot_dimension_numbers<[1], [0], [0], [1], [0, 0, 1, 1], [], []>} : vector<4x4xf32>, vector<4x256xf32>, vector<4x256xf32> -> vector<4x256xf32>
    %145 = arith.addf %140, %144 : vector<4x256xf32>
    %146 = vector.extract_strided_slice %134 {offsets = [2, 0, 0], sizes = [1, 4, 4], strides = [1, 1, 1]} : vector<3x4x4xf32> to vector<1x4x4xf32>
    %147 = vector.shape_cast %146 : vector<1x4x4xf32> to vector<4x4xf32>
    %148 = vector.extract_strided_slice %132 {offsets = [0, 2], sizes = [4, 256], strides = [1, 1]} : vector<4x258xf32> to vector<4x256xf32>
    %cst_62 = arith.constant dense<0.000000e+00> : vector<4x256xf32>
    %149 = tpu.matmul %147, %148, %cst_62 {dimension_numbers = #tpu.dot_dimension_numbers<[1], [0], [0], [1], [0, 0, 1, 1], [], []>} : vector<4x4xf32>, vector<4x256xf32>, vector<4x256xf32> -> vector<4x256xf32>
    %150 = arith.addf %145, %149 : vector<4x256xf32>
    %151 = vector.broadcast %136 : vector<4x1xf32> to vector<4x256xf32>
    %152 = arith.addf %150, %151 : vector<4x256xf32>
    %153 = vector.extract_strided_slice %82 {offsets = [0, 4], sizes = [4, 256], strides = [1, 1]} : vector<4x264xf32> to vector<4x256xf32>
    %154 = arith.addf %152, %153 : vector<4x256xf32>
    %155 = vector.extract_strided_slice %11 {offsets = [0, 6], sizes = [1, 256], strides = [1, 1]} : vector<1x268xi32> to vector<1x256xi32>
    %c0_i32_63 = arith.constant 0 : i32
    %156 = vector.broadcast %c0_i32_63 : i32 to vector<1x256xi32>
    %157 = arith.cmpi sge, %155, %156 : vector<1x256xi32>
    %c16_i32_64 = arith.constant 16 : i32
    %158 = vector.broadcast %c16_i32_64 : i32 to vector<1x256xi32>
    %159 = arith.cmpi slt, %155, %158 : vector<1x256xi32>
    %160 = arith.andi %157, %159 : vector<1x256xi1>
    %cst_65 = arith.constant 0.000000e+00 : f32
    %161 = vector.broadcast %cst_65 : f32 to vector<4x256xf32>
    %162 = arith.cmpf oge, %154, %161 : vector<4x256xf32>
    %cst_66 = arith.constant 1.000000e-01 : f32
    %163 = vector.broadcast %cst_66 : f32 to vector<4x256xf32>
    %164 = arith.mulf %163, %154 : vector<4x256xf32>
    %165 = arith.select %162, %154, %164 : vector<4x256xi1>, vector<4x256xf32>
    %cst_67 = arith.constant 0.000000e+00 : f32
    %166 = vector.shape_cast %160 : vector<1x256xi1> to vector<1x256xi1>
    %167 = vector.broadcast %166 : vector<1x256xi1> to vector<4x256xi1>
    %168 = vector.broadcast %cst_67 : f32 to vector<4x256xf32>
    %169 = arith.select %167, %165, %168 : vector<4x256xi1>, vector<4x256xf32>
    %c2 = arith.constant 2 : index
    %c0_68 = arith.constant 0 : index
    %c0_69 = arith.constant 0 : index
    %c0_70 = arith.constant 0 : index
    %170 = vector.load %arg4[%c2, %c0_68, %c0_69, %c0_70] : memref<3x3x4x4xf32, #tpu.memory_space<vmem>>, vector<1x3x4x4xf32>
    %171 = vector.shape_cast %170 : vector<1x3x4x4xf32> to vector<3x4x4xf32>
    %c2_71 = arith.constant 2 : index
    %c0_72 = arith.constant 0 : index
    %c0_73 = arith.constant 0 : index
    %172 = vector.load %arg5[%c2_71, %c0_72, %c0_73] : memref<3x4x1xf32, #tpu.memory_space<vmem>>, vector<1x4x1xf32>
    %173 = vector.shape_cast %172 : vector<1x4x1xf32> to vector<4x1xf32>
    %174 = vector.extract_strided_slice %171 {offsets = [0, 0, 0], sizes = [1, 4, 4], strides = [1, 1, 1]} : vector<3x4x4xf32> to vector<1x4x4xf32>
    %175 = vector.shape_cast %174 : vector<1x4x4xf32> to vector<4x4xf32>
    %176 = vector.extract_strided_slice %169 {offsets = [0, 0], sizes = [4, 246], strides = [1, 1]} : vector<4x256xf32> to vector<4x246xf32>
    %cst_74 = arith.constant dense<0.000000e+00> : vector<4x246xf32>
    %177 = tpu.matmul %175, %176, %cst_74 {dimension_numbers = #tpu.dot_dimension_numbers<[1], [0], [0], [1], [0, 0, 1, 1], [], []>} : vector<4x4xf32>, vector<4x246xf32>, vector<4x246xf32> -> vector<4x246xf32>
    %178 = vector.extract_strided_slice %171 {offsets = [1, 0, 0], sizes = [1, 4, 4], strides = [1, 1, 1]} : vector<3x4x4xf32> to vector<1x4x4xf32>
    %179 = vector.shape_cast %178 : vector<1x4x4xf32> to vector<4x4xf32>
    %180 = vector.extract_strided_slice %169 {offsets = [0, 5], sizes = [4, 246], strides = [1, 1]} : vector<4x256xf32> to vector<4x246xf32>
    %cst_75 = arith.constant dense<0.000000e+00> : vector<4x246xf32>
    %181 = tpu.matmul %179, %180, %cst_75 {dimension_numbers = #tpu.dot_dimension_numbers<[1], [0], [0], [1], [0, 0, 1, 1], [], []>} : vector<4x4xf32>, vector<4x246xf32>, vector<4x246xf32> -> vector<4x246xf32>
    %182 = arith.addf %177, %181 : vector<4x246xf32>
    %183 = vector.extract_strided_slice %171 {offsets = [2, 0, 0], sizes = [1, 4, 4], strides = [1, 1, 1]} : vector<3x4x4xf32> to vector<1x4x4xf32>
    %184 = vector.shape_cast %183 : vector<1x4x4xf32> to vector<4x4xf32>
    %185 = vector.extract_strided_slice %169 {offsets = [0, 10], sizes = [4, 246], strides = [1, 1]} : vector<4x256xf32> to vector<4x246xf32>
    %cst_76 = arith.constant dense<0.000000e+00> : vector<4x246xf32>
    %186 = tpu.matmul %184, %185, %cst_76 {dimension_numbers = #tpu.dot_dimension_numbers<[1], [0], [0], [1], [0, 0, 1, 1], [], []>} : vector<4x4xf32>, vector<4x246xf32>, vector<4x246xf32> -> vector<4x246xf32>
    %187 = arith.addf %182, %186 : vector<4x246xf32>
    %188 = vector.broadcast %173 : vector<4x1xf32> to vector<4x246xf32>
    %189 = arith.addf %187, %188 : vector<4x246xf32>
    %190 = vector.extract_strided_slice %11 {offsets = [0, 11], sizes = [1, 246], strides = [1, 1]} : vector<1x268xi32> to vector<1x246xi32>
    %c0_i32_77 = arith.constant 0 : i32
    %191 = vector.broadcast %c0_i32_77 : i32 to vector<1x246xi32>
    %192 = arith.cmpi sge, %190, %191 : vector<1x246xi32>
    %c16_i32_78 = arith.constant 16 : i32
    %193 = vector.broadcast %c16_i32_78 : i32 to vector<1x246xi32>
    %194 = arith.cmpi slt, %190, %193 : vector<1x246xi32>
    %195 = arith.andi %192, %194 : vector<1x246xi1>
    %cst_79 = arith.constant 0.000000e+00 : f32
    %196 = vector.broadcast %cst_79 : f32 to vector<4x246xf32>
    %197 = arith.cmpf oge, %189, %196 : vector<4x246xf32>
    %cst_80 = arith.constant 1.000000e-01 : f32
    %198 = vector.broadcast %cst_80 : f32 to vector<4x246xf32>
    %199 = arith.mulf %198, %189 : vector<4x246xf32>
    %200 = arith.select %197, %189, %199 : vector<4x246xi1>, vector<4x246xf32>
    %cst_81 = arith.constant 0.000000e+00 : f32
    %201 = vector.shape_cast %195 : vector<1x246xi1> to vector<1x246xi1>
    %202 = vector.broadcast %201 : vector<1x246xi1> to vector<4x246xi1>
    %203 = vector.broadcast %cst_81 : f32 to vector<4x246xf32>
    %204 = arith.select %202, %200, %203 : vector<4x246xi1>, vector<4x246xf32>
    %c2_82 = arith.constant 2 : index
    %c0_83 = arith.constant 0 : index
    %c0_84 = arith.constant 0 : index
    %c0_85 = arith.constant 0 : index
    %205 = vector.load %arg6[%c2_82, %c0_83, %c0_84, %c0_85] : memref<3x3x4x4xf32, #tpu.memory_space<vmem>>, vector<1x3x4x4xf32>
    %206 = vector.shape_cast %205 : vector<1x3x4x4xf32> to vector<3x4x4xf32>
    %c2_86 = arith.constant 2 : index
    %c0_87 = arith.constant 0 : index
    %c0_88 = arith.constant 0 : index
    %207 = vector.load %arg7[%c2_86, %c0_87, %c0_88] : memref<3x4x1xf32, #tpu.memory_space<vmem>>, vector<1x4x1xf32>
    %208 = vector.shape_cast %207 : vector<1x4x1xf32> to vector<4x1xf32>
    %209 = vector.extract_strided_slice %206 {offsets = [0, 0, 0], sizes = [1, 4, 4], strides = [1, 1, 1]} : vector<3x4x4xf32> to vector<1x4x4xf32>
    %210 = vector.shape_cast %209 : vector<1x4x4xf32> to vector<4x4xf32>
    %211 = vector.extract_strided_slice %204 {offsets = [0, 0], sizes = [4, 244], strides = [1, 1]} : vector<4x246xf32> to vector<4x244xf32>
    %cst_89 = arith.constant dense<0.000000e+00> : vector<4x244xf32>
    %212 = tpu.matmul %210, %211, %cst_89 {dimension_numbers = #tpu.dot_dimension_numbers<[1], [0], [0], [1], [0, 0, 1, 1], [], []>} : vector<4x4xf32>, vector<4x244xf32>, vector<4x244xf32> -> vector<4x244xf32>
    %213 = vector.extract_strided_slice %206 {offsets = [1, 0, 0], sizes = [1, 4, 4], strides = [1, 1, 1]} : vector<3x4x4xf32> to vector<1x4x4xf32>
    %214 = vector.shape_cast %213 : vector<1x4x4xf32> to vector<4x4xf32>
    %215 = vector.extract_strided_slice %204 {offsets = [0, 1], sizes = [4, 244], strides = [1, 1]} : vector<4x246xf32> to vector<4x244xf32>
    %cst_90 = arith.constant dense<0.000000e+00> : vector<4x244xf32>
    %216 = tpu.matmul %214, %215, %cst_90 {dimension_numbers = #tpu.dot_dimension_numbers<[1], [0], [0], [1], [0, 0, 1, 1], [], []>} : vector<4x4xf32>, vector<4x244xf32>, vector<4x244xf32> -> vector<4x244xf32>
    %217 = arith.addf %212, %216 : vector<4x244xf32>
    %218 = vector.extract_strided_slice %206 {offsets = [2, 0, 0], sizes = [1, 4, 4], strides = [1, 1, 1]} : vector<3x4x4xf32> to vector<1x4x4xf32>
    %219 = vector.shape_cast %218 : vector<1x4x4xf32> to vector<4x4xf32>
    %220 = vector.extract_strided_slice %204 {offsets = [0, 2], sizes = [4, 244], strides = [1, 1]} : vector<4x246xf32> to vector<4x244xf32>
    %cst_91 = arith.constant dense<0.000000e+00> : vector<4x244xf32>
    %221 = tpu.matmul %219, %220, %cst_91 {dimension_numbers = #tpu.dot_dimension_numbers<[1], [0], [0], [1], [0, 0, 1, 1], [], []>} : vector<4x4xf32>, vector<4x244xf32>, vector<4x244xf32> -> vector<4x244xf32>
    %222 = arith.addf %217, %221 : vector<4x244xf32>
    %223 = vector.broadcast %208 : vector<4x1xf32> to vector<4x244xf32>
    %224 = arith.addf %222, %223 : vector<4x244xf32>
    %225 = vector.extract_strided_slice %154 {offsets = [0, 6], sizes = [4, 244], strides = [1, 1]} : vector<4x256xf32> to vector<4x244xf32>
    %226 = arith.addf %224, %225 : vector<4x244xf32>
    %227 = vector.extract_strided_slice %226 {offsets = [0, 116], sizes = [4, 128], strides = [1, 1]} : vector<4x244xf32> to vector<4x128xf32>
    %c0_92 = arith.constant 0 : index
    %c0_93 = arith.constant 0 : index
    %c0_94 = arith.constant 0 : index
    %228 = vector.load %arg8[%c0_92, %c0_93, %c0_94] : memref<1x4x128xf32, #tpu.memory_space<vmem>>, vector<1x4x128xf32>
    %229 = vector.shape_cast %228 : vector<1x4x128xf32> to vector<4x128xf32>
    %230 = vector.shape_cast %227 : vector<4x128xf32> to vector<1x4x128xf32>
    tpu.vector_store %arg8[%c0_92, %c0_93, %c0_94], %230 {strides = array<i32>} : memref<1x4x128xf32, #tpu.memory_space<vmem>>, vector<1x4x128xf32>,
    return
  }
  func.func @transform_0(%arg0: i32, %arg1: i32) -> (i32, i32, i32) {
    %c0_i32 = arith.constant 0 : i32
    %c0_i32_0 = arith.constant 0 : i32
    return %arg0, %c0_i32, %arg1 : i32, i32, i32
  }
  func.func @transform_1(%arg0: i32, %arg1: i32) -> (i32, i32, i32, i32) {
    %c0_i32 = arith.constant 0 : i32
    %c0_i32_0 = arith.constant 0 : i32
    %c0_i32_1 = arith.constant 0 : i32
    return %arg0, %arg1, %c0_i32, %c0_i32_0 : i32, i32, i32, i32
  }
  func.func @transform_2(%arg0: i32, %arg1: i32) -> (i32, i32, i32, i32) {
    %c0_i32 = arith.constant 0 : i32
    %c0_i32_0 = arith.constant 0 : i32
    %c0_i32_1 = arith.constant 0 : i32
    %c0_i32_2 = arith.constant 0 : i32
    %c0_i32_3 = arith.constant 0 : i32
    return %c0_i32, %c0_i32_0, %c0_i32_1, %c0_i32_2 : i32, i32, i32, i32
  }
  func.func @transform_3(%arg0: i32, %arg1: i32) -> (i32, i32, i32) {
    %c0_i32 = arith.constant 0 : i32
    %c0_i32_0 = arith.constant 0 : i32
    %c0_i32_1 = arith.constant 0 : i32
    %c0_i32_2 = arith.constant 0 : i32
    return %c0_i32, %c0_i32_0, %c0_i32_1 : i32, i32, i32
  }
  func.func @transform_4(%arg0: i32, %arg1: i32) -> (i32, i32, i32, i32) {
    %c0_i32 = arith.constant 0 : i32
    %c0_i32_0 = arith.constant 0 : i32
    %c0_i32_1 = arith.constant 0 : i32
    %c0_i32_2 = arith.constant 0 : i32
    %c0_i32_3 = arith.constant 0 : i32
    return %c0_i32, %c0_i32_0, %c0_i32_1, %c0_i32_2 : i32, i32, i32, i32
  }
  func.func @transform_5(%arg0: i32, %arg1: i32) -> (i32, i32, i32) {
    %c0_i32 = arith.constant 0 : i32
    %c0_i32_0 = arith.constant 0 : i32
    %c0_i32_1 = arith.constant 0 : i32
    %c0_i32_2 = arith.constant 0 : i32
    return %c0_i32, %c0_i32_0, %c0_i32_1 : i32, i32, i32
  }
  func.func @transform_6(%arg0: i32, %arg1: i32) -> (i32, i32, i32) {
    %c0_i32 = arith.constant 0 : i32
    %c0_i32_0 = arith.constant 0 : i32
    return %arg0, %c0_i32, %arg1 : i32, i32, i32
  }
}

</mosaic_0001>

<bundles_post_ra>
// kernel: tpu_custom_call.1
= control target key start
LH: loop header
LB: loop body
LE: loop exit
PB: predicated region body
PF: predicated region fallthrough
CT: control target
= control target key end

     0   :  { %s4134_s0 = inlined_call_operand.hbm [shape: f32[2,4,16], index: 0, kind: input, shape index: {}]   ;;  %s4135_s1 = inlined_call_operand.hbm [shape: f32[2,1,4,140], index: 1, kind: input, shape index: {}]   ;;  %s4136_s2 = inlined_call_operand.vmem [shape: f32[3,3,4,4], index: 2, kind: input, shape index: {}]   ;;  %s4137_s3 = inlined_call_operand.vmem [shape: f32[3,4,1], index: 3, kind: input, shape index: {}]   ;;  %s4138_s4 = inlined_call_operand.hbm [shape: f32[3,3,4,4], index: 4, kind: input, shape index: {}]   ;;  %s4139_s5 = inlined_call_operand.vmem [shape: f32[3,4,1], index: 5, kind: input, shape index: {}]   ;;  %s4140_s6 = inlined_call_operand.hbm [shape: f32[2,4,16], index: 6, kind: output, shape index: {}]  }
   0x1   :  { %4146 = sst [smem:[#allocation15_spill]] %s4134_s0 }
   0x2   :  { %4147 = sst [smem:[#allocation16_spill]] %s4138_s4 }
   0x3   :  { %11 = vsyncpa [#allocation3], 0 }
   0x4   :  { %13 = vsyncpa [#allocation3 + $0x1], 0 }
   0x5   :  { %14 = vsyncpa [#allocation6], 0 }
   0x6   :  { %16 = vsyncpa [#allocation6 + $0x1], 0 }
   0x7   :  { %17 = vsyncpa [#allocation4], 0 }
   0x8   :  { %19 = vsyncpa [#allocation4 + $0x1], 0  ;;  %s3590_s21 = smov 0   ;;  %s3592_s22 = smov 0  }
   0x9   :  { %s3594_s23 = smov 0   ;;  %s3596_s24 = smov 0  }
   0xa   :  { %s3598_s25 = smov 0   ;;  %s3600_s26 = smov 0  }
   0xb LB: > { %s3621_s27 = sadd.s32 4294967295, %s3526_s26   ;;  %s2988_s28 = sadd.s32 4294967294, %s3526_s26   ;;  %s3526_s26 = sphi %s3600_s26, %s25_s26   ;;  %s3522_s25 = sphi %s3598_s25, %s4174_s25   ;;  %s3518_s24 = sphi %s3596_s24, %s4173_s24   ;;  %s3514_s23 = sphi %s3594_s23, %s4172_s23   ;;  %s3510_s22 = sphi %s3592_s22, %s4171_s22   ;;  %s3506_s21 = sphi %s3590_s21, %s4170_s21  }
   0xc   : > { %p59_p0 = scmp.ne.s32.totalorder %s3510_s22, %s3506_s21  ;;  %p4141_p1 = scmp.eq.s32.totalorder %s3621_s27, 0 }
   0xd   : > { %p203_p3 = scmp.eq.s32.totalorder %s2988_s28, 1  ;;  %p2989_p5 = scmp.ge.s32.totalorder %s3526_s26, 1 }
   0xe   : > { %p3630_p4 = por %p4141_p1, %p59_p0  ;;  %p210_p7 = scmp.lt.s32.totalorder %s3526_s26, 3 }
   0xf   : > { %p3635_p6 = por %p203_p3, %p59_p0  ;;  %s3528_s8 = smov [#allocation7]  }
  0x10   : > { %s4148_s29 = scalar_select %p3630_p4, 1, 0 }
  0x11   : > { %s4149_s30 = scalar_select %p3635_p6, 1, 0 }
  0x12   : > { %p3640_p8 = pnand %p2989_p5, %p210_p7  ;;  %s228_s9 = sshll.u32 %s3528_s8, 4  ;;  %s229_s9 = int_to_ptr.vmem [resolvable:$true] %s228_s9 }
  0x13   : > { %s37_s11 = sadd.s32 1, %s3522_s25  ;;  %s4152_s4 = sld [smem:[#allocation16_spill]] }
  0x14   : > { %s4150_s7 = scalar_select %p3640_p8, 1, 0 }
  0x15   : > { %p3184_p9 = pneg %p3640_p8 }
  0x17   : > { %p3649_p11 = pnand %p3184_p9, %p4141_p1 }
  0x19   : > { %s3348_s14 = scalar_lea.hbm %s4152_s4, 576  ;;  %p3350_p13 = pneg %p3649_p11 }
  0x1a   : > { %p3349_p12 = scmp.ne.s32.totalorder %s4152_s4, %s3348_s14  ;;  %p3355_p5 = scmp.lt.u32.totalorder %s3348_s14, %s4152_s4 }
  0x1c   : > { %p3351_p0 = pnand %p3350_p13, %p3349_p12 }
  0x1e   : > { %p3352_p3 = pneg %p3351_p0 }
  0x20   : > { %p3357_p7 = pnand %p3355_p5, %p3352_p3 }
  0x22   : > { %3360 = shalt.err (!%p3357_p7)
}
  0x23   : > { %s3361_s19 = scalar_lea.vmem %s229_s9, 576  ;;  %p3369_p2 = scmp.lt.s32.totalorder %s229_s9, %s229_s9 }
  0x24   : > { %p3362_p9 = scmp.ne.s32.totalorder %s229_s9, %s3361_s19  ;;  %p3370_p6 = scmp.lt.s32.totalorder %s3361_s19, %s3361_s19 }
  0x26   : > { %p3364_p10 = pnand %p3362_p9, %p3350_p13  ;;  %p3371_p4 = por %p3370_p6, %p3369_p2 }
  0x28   : > { %p3365_p1 = pneg %p3364_p10 }
  0x2a   : > { %p3372_p8 = pnand %p3371_p4, %p3365_p1 }
  0x2c   : > { %3375 = shalt.err (!%p3372_p8)
}
  0x2d   : > { %s3529_s20 = smov 64   ;;  %s3530_s28 = smov 4  }
  0x2e   : > { %3187 = dma.hbm_to_vmem [thread:$0]  (!%p3649_p11), %s4152_s4, 576, %s229_s9, [#allocation6], %s3529_s20, %s3529_s20, %s3530_s28  }
  0x2f   : > { %p39_p1 = scmp.ge.s32.totalorder %s37_s11, 2  ;;  %s46_s13 = sadd.s32 1, %s3514_s23 }
  0x30   : > { %p53_p2 = scmp.ne.s32.totalorder %s3514_s23, %s3510_s22  ;;  %p54_p4 = scmp.eq.s32.totalorder %s3526_s26, 0 }
  0x31   : > { %s4176_s11 = smov (%p39_p1, %s37_s11), 0  ;;  %p4155_p8 = scmp.eq.s32.totalorder %s3621_s27, 1 }
  0x32   : > { %4153 = sst [smem:[#allocation13_spill]] %s4176_s11  ;;  %p3676_p6 = por %p54_p4, %p53_p2 }
  0x33   : > { %p3682_p10 = por %p4155_p8, %p53_p2  ;;  %s41_s15 = ssub.s32 %s3522_s25, %s4176_s11 }
  0x34   : > { %p3200_p11 = scmp.lt.s32.totalorder %s3526_s26, 2  ;;  %p44_p12 = scmp.eq.s32.totalorder %s41_s15, 0 }
  0x35   : > { %s4156_s10 = scalar_select %p3682_p10, 1, 0 }
  0x36   : > { %s3690_s9 = sand.u32 1, %s3514_s23   ;;  %s2993_s18 = sshll.u32 %s3522_s25, 6 }
  0x37   : > { %s2992_s16 = sshll.u32 %s3690_s9, 2  ;;  %s4158_s0 = sld [smem:[#allocation15_spill]] }
  0x38   : > { %s3694_s17 = scalar_select %p44_p12, %s3514_s23, %s46_s13  }
  0x39   : > { %s249_s8 = scalar_lea.vmem [#allocation2], %s2992_s16  ;;  %p3706_p13 = pnand %p3200_p11, %p3676_p6 }
  0x3a   : > { %4157 = sst [smem:[#allocation14_spill]] %s3694_s17  ;;  %s257_s12 = sshll.u32 %s249_s8, 4  ;;  %s3702_s12 = int_to_ptr.vmem [resolvable:$true] %s257_s12 }
  0x3b   : > { %s2994_s4 = sshll.u32 %s3690_s9, 3  ;;  %s246_s19 = scalar_lea.sflag [#allocation3], %s3690_s9 }
  0x3c   : > { %p3378_p3 = pneg %p3706_p13 }
  0x3d   : > { %s3700_s28 = scalar_lea.hbm %s4158_s0, %s2993_s18  ;;  %s3381_s14 = scalar_lea.hbm %s4158_s0, 128 }
  0x3e   : > { %s3376_s18 = scalar_lea.hbm %s3700_s28, 64  ;;  %p3382_p9 = scmp.lt.u32.totalorder %s3700_s28, %s4158_s0 }
  0x3f   : > { %p3377_p0 = scmp.ne.s32.totalorder %s3700_s28, %s3376_s18  ;;  %p3383_p1 = scmp.lt.u32.totalorder %s3381_s14, %s3376_s18 }
  0x40   : > { %p3385_p4 = scmp.lt.u32.totalorder %s3376_s18, %s3700_s28 }
  0x41   : > { %p3379_p5 = pnand %p3378_p3, %p3377_p0  ;;  %p3384_p2 = por %p3383_p1, %p3382_p9 }
  0x43   : > { %p3380_p7 = pneg %p3379_p5  ;;  %p3386_p6 = por %p3385_p4, %p3384_p2 }
  0x45   : > { %p3387_p8 = pnand %p3386_p6, %p3380_p7 }
  0x47   : > { %3390 = shalt.err (!%p3387_p8)
}
  0x48   : > { %s3391_s13 = scalar_lea.vmem %s3702_s12, 64  ;;  %s3531_s16 = smov [#allocation2]  }
  0x49   : > { %p3392_p11 = scmp.ne.s32.totalorder %s3702_s12, %s3391_s13  ;;  %s3396_s20 = sshll.u32 %s3531_s16, 4  ;;  %s3397_s20 = int_to_ptr.vmem [resolvable:$false] %s3396_s20 }
  0x4a   : > { %s3398_s11 = scalar_lea.vmem %s3397_s20, 128  ;;  %p3399_p5 = scmp.lt.s32.totalorder %s3702_s12, %s3397_s20 }
  0x4b   : > { %p3394_p12 = pnand %p3392_p11, %p3378_p3  ;;  %p3400_p9 = scmp.lt.s32.totalorder %s3398_s11, %s3391_s13 }
  0x4d   : > { %p3395_p0 = pneg %p3394_p12  ;;  %p3401_p1 = por %p3400_p9, %p3399_p5 }
  0x4f   : > { %p3402_p2 = pnand %p3401_p1, %p3395_p0 }
  0x51   : > { %3405 = shalt.err (!%p3402_p2)
}
  0x52   : > { %3191 = dma.hbm_to_vmem [thread:$0]  (!%p3706_p13), %s3700_s28, 64, %s3702_s12, %s246_s19  }
  0x53   : > { %s3086_s18 = sshll.u32 %s3522_s25, 7  ;;  %s268_s13 = scalar_lea.vmem [#allocation5], %s2994_s4 }
  0x54   : > { %s3742_s16 = scalar_lea.hbm %s4135_s1, %s3086_s18  ;;  %s278_s20 = sshll.u32 %s268_s13, 4  ;;  %s279_s20 = int_to_ptr.vmem [resolvable:$true] %s278_s20 }
  0x55   : > { %s4160_s11 = sand.u32 1, %s3526_s26   ;;  %s3406_s17 = scalar_lea.hbm %s3742_s16, 128 }
  0x56   : > { %s265_s0 = scalar_lea.sflag [#allocation6], %s4160_s11  ;;  %p3407_p7 = scmp.ne.s32.totalorder %s3742_s16, %s3406_s17 }
  0x57   : > { %s3411_s19 = scalar_lea.hbm %s4135_s1, 256  ;;  %p3412_p8 = scmp.lt.u32.totalorder %s3742_s16, %s4135_s1 }
  0x58   : > { %p3409_p4 = pnand %p3407_p7, %p3378_p3  ;;  %p3413_p11 = scmp.lt.u32.totalorder %s3411_s19, %s3406_s17 }
  0x59   : > { %p3415_p0 = scmp.lt.u32.totalorder %s3406_s17, %s3742_s16 }
  0x5a   : > { %p3410_p6 = pneg %p3409_p4  ;;  %p3414_p12 = por %p3413_p11, %p3412_p8 }
  0x5c   : > { %p3416_p5 = por %p3415_p0, %p3414_p12 }
  0x5e   : > { %p3417_p9 = pnand %p3416_p5, %p3410_p6 }
  0x60   : > { %3420 = shalt.err (!%p3417_p9)
}
  0x61   : > { %s3421_s4 = scalar_lea.vmem %s279_s20, 128  ;;  %s3532_s14 = smov [#allocation5]  }
  0x62   : > { %p3422_p1 = scmp.ne.s32.totalorder %s279_s20, %s3421_s4  ;;  %s3426_s8 = sshll.u32 %s3532_s14, 4  ;;  %s3427_s8 = int_to_ptr.vmem [resolvable:$false] %s3426_s8 }
  0x63   : > { %s3428_s13 = scalar_lea.vmem %s3427_s8, 256  ;;  %p3429_p4 = scmp.lt.s32.totalorder %s279_s20, %s3427_s8 }
  0x64   : > { %p3424_p2 = pnand %p3422_p1, %p3378_p3  ;;  %p3430_p10 = scmp.lt.s32.totalorder %s3428_s13, %s3421_s4 }
  0x66   : > { %p3425_p7 = pneg %p3424_p2  ;;  %p3431_p8 = por %p3430_p10, %p3429_p4 }
  0x68   : > { %p3432_p11 = pnand %p3431_p8, %p3425_p7 }
  0x6a   : > { %3435 = shalt.err (!%p3432_p11)
}
  0x6b   : > { %3194 = dma.hbm_to_vmem [thread:$0]  (!%p3706_p13), %s3742_s16, 128, %s279_s20, %s265_s0  }
  0x6c   : > { %p4161_p6 = scmp.ne.s32.totalorder %s4150_s7, 0 }
  0x6d   : > { %s3770_s17 = sand.u32 (!%p4161_p6), 1, %s3510_s22   ;;  %p4162_p10 = scmp.ne.s32.totalorder (!%p4161_p6), %s4148_s29, 0 }
  0x6e   : > { %287 = sbr.rel (%p4161_p6) target bundleno = 2959 (0xb8f), region = 44  ;;  %s2998_s11 = sshll.u32 (!%p4161_p6), %s3770_s17, 2 }
  0x6f   : > { %s290_s28 = scalar_lea.sflag (!%p4161_p6), [#allocation3], %s3770_s17  ;;  %s293_s12 = scalar_lea.vmem (!%p4161_p6), [#allocation2], %s2998_s11 }
  0x75   : > { %3489 = dma.done.wait (%p4162_p10), %s290_s28, 64  }
  0x76   : > { %3491 = vsyncadd (%p4162_p10), %s290_s28, 4294967232  ;;  %s298_s0 = sand.u32 1, %s3621_s27   ;;  %s2999_s7 = sshll.u32 %s3770_s17, 3 }
  0x77   : > { %s299_s15 = scalar_lea.sflag [#allocation6], %s298_s0  ;;  %s3782_s16 = scalar_lea.vmem [#allocation5], %s2999_s7 }
  0x78   : > { %3493 = dma.done.wait (%p4162_p10), %s299_s15, 128  }
  0x79   : > { %3495 = vsyncadd (%p4162_p10), %s299_s15, 4294967168  ;;  %p4163_p13 = scmp.eq.s32.totalorder %s3621_s27, 0 }
  0x7b   : > { %3497 = dma.done.wait (%p4163_p13), [#allocation6], 576   ;;  %p4164_p3 = pmov %p4163_p13 }
  0x7c   : > { %v347_v0 = vlaneseq  ;;  %v3533_v1 = vmov 0.0   ;;  %v3796_v5 = vld [vmem:[%s293_s12] sm:$0xf]  ;;  %vm402_vm2 = vcmask 1043456   ;;  %s3534_s27 = smov 126   ;;  %s3535_s29 = smov 127  }
  0x7d   : > { %3499 = vsyncadd (%p4164_p3), [#allocation6], 4294966720  ;;  %623 = vmatprep.mubr.f32.mxu0 %v3533_v1  ;;  %473 = vmatprep.mubr.f32.mxu1 %v3533_v1  ;;  %vm365_vm1 = vcmp.ge.f32.partialorder %v3796_v5, 0.0  ;;  %v368_v6 = vmul.f32 0.1, %v3796_v5  ;;  %vm398_vm3 = vcmask 31744  }
  0x7e   : > { %v348_v2 = vand.u32 127, %v347_v0  ;;  %v382_v9 = vld [vmem:[%s4136_s2] sm:$0xf]  ;;  %v3536_v11 = vmov 0   ;;  %vm395_vm4 = vcmask 1039360   ;;  %vm706_vm5 = vcmask 1031168  }
  0x7f   : > { %v371_v7 = vsel %vm365_vm1, %v3796_v5, %v368_v6  ;;  %v385_v10 = vld [vmem:[%s4137_s3] sm:$0xf]  ;;  %3285 = vset.pattern.permute.xlu0 %v3536_v11  ;;  %3331 = vset.pattern.permute.xlu1 %v3536_v11  ;;  %v383_v24 = vld [vmem:[%s4136_s2 + $0x4] sm:$0xf]  ;;  %v384_v25 = vld [vmem:[%s4136_s2 + $0x8] sm:$0xf] }
  0x80   : > { %v349_v3 = vadd.s32 128, %v348_v2  ;;  %vm3537_vm6 = vmmov 0   ;;  %s3538_s28 = smov 1   ;;  %s3539_s12 = smov 125   ;;  %v342_v45 = vld [vmem:[%s3782_s16] sm:$0xff]  ;;  %vm888_vm9 = vcmask 7168  }
  0x81   : > { %v345_v46 = vcombine.high %v342_v45, %v342_v45  ;;  %v898_v53 = vld [vmem:[#allocation7 + $0x4] sm:$0xf]  ;;  %v897_v56 = vld [vmem:[#allocation7] sm:$0xf]  ;;  %v900_v58 = vld [vmem:[%s4139_s5] sm:$0xf] }
  0x82   : > { %v3794_v4 = vadd.s32 4294967168, %v349_v3  ;;  %v899_v60 = vld [vmem:[#allocation7 + $0x8] sm:$0xf]  ;;  %vm1226_vm10 = vcmask 1022976   ;;  %s3540_s15 = smov 2   ;;  %s3541_s16 = smov 123  }
  0x83   : > { %vm1423_vm13 = vcmask 15360   ;;  %vm1447_vm14 = vcmask 1006592   ;;  %vm1764_vm15 = vcmask 982016   ;;  %s3543_s13 = smov 5   ;;  %s3546_s0 = smov 124  }
  0x84   : > { %vm359_vm0 = vcmp.lt.s32.totalorder %v3794_v4, 16  ;;  %s3549_s20 = smov 112   ;;  %s3552_s7 = smov 115  }
  0x85   : > { %v380_v8 = vsel %vm359_vm0, %v371_v7, 0.0  ;;  %s2858_s4 = scalar_lea.sflag [#allocation4], %s3770_s17  ;;  %p4165_p0 = scmp.ne.s32.totalorder %s4156_s10, 0 }
  0x86   : > { %702 = vrot.lane.b32.xlu1 %v380_v8, %s3534_s27  ;;  %391 = vrot.lane.b32.xlu0 %v380_v8, %s3535_s29 }
  0x87   : > { %3007 = vmatprep.subr.msk.mxu0 %vm402_vm2, %v380_v8 }
  0x88   : > { %560 = vmatpush1.msra.mxu0 %v3533_v1 }
  0x89   : > { %3008 = vmatmul.mubr.msk.f32.vlgmr.msra.gmra.mrb[0].mxu0 %vm398_vm3, %v382_v9 }
  0x8a   : > { %3281 = vrot.lane.b32.xlu1 %v3533_v1, %s3534_s27  ;;  %3276 = vrot.lane.b32.xlu0 %v3533_v1, %s3535_s29 }
  0x8b   : > { %782 = vmatprep.mubr.f32.mxu0 %v3533_v1 }
  0x8e   : > { %864 = vperm.xlu0 %3285, %v385_v10  }
  0xf8   : > { %v703_v12 = vpop.permute.xlu1 %702  ;;  %v392_v13 = vpop.permute.xlu0 %391 }
  0xfc   : > { %v3282_v14 = vpop.permute.xlu1 %3281  ;;  %v3277_v15 = vpop.permute.xlu0 %3276 }
  0xfd   : > { %v3284_v16 = vunpack.i.h.bf16 %v3282_v14  ;;  %v3283_v17 = vunpack.i.l.bf16 %v3282_v14  ;;  %v3279_v18 = vunpack.i.h.bf16 %v3277_v15  ;;  %v3278_v19 = vunpack.i.l.bf16 %v3277_v15 }
  0xff   : > { %v397_v20 = vsel %vm395_vm4, %v392_v13, %v3278_v19  ;;  %v708_v21 = vsel %vm706_vm5, %v703_v12, %v3283_v17  ;;  %v396_v22 = vsel %vm395_vm4, %v3279_v18, %v392_v13  ;;  %v707_v23 = vsel %vm706_vm5, %v3284_v16, %v703_v12 }
 0x100   : > { %3002 = vmatprep.subr.msk.mxu1 %vm402_vm2, %v397_v20  ;;  %3010 = vmatprep.subr.msk.mxu0 %vm402_vm2, %v708_v21 }
 0x101   : > { %3003 = vmatpush1.msk.msra.mxu1 %vm402_vm2, %v396_v22  ;;  %3011 = vmatpush1.msk.msra.mxu0 %vm402_vm2, %v707_v23 }
 0x102   : > { %3004 = vmatmul.mubr.msk.f32.vlgmr.msra.gmra.mrb[0].mxu1 %vm398_vm3, %v383_v24  ;;  %3105 = vmatprep.subr.mxu1 %v3533_v1 }
 0x103   : > { %3012 = vmatmul.mubr.msk.f32.vlgmr.msra.gmra.mrb[0].mxu0 %vm398_vm3, %v384_v25  ;;  %3106 = vmatpush3.msk.msra.mxu1 %vm402_vm2, %v3278_v19 }
 0x104   : > { %3107 = vmatprep.mubr.msk.f32.mxu1 %vm3537_vm6, %v3533_v1  ;;  %3110 = vmatprep.subr.mxu1 %v3533_v1 }
 0x105   : > { %985 = vmatprep.mubr.f32.mxu0 %v3533_v1 }
 0x106   : > { %3108 = vmatmul.mubr.msk.f32.vlgmr.msra.gmra.mrb[2].mxu1 %vm398_vm3, %v383_v24 }
 0x107   : > { %3111 = vmatpush3.msra.mxu1 %v3533_v1  ;;  %3112 = vmatprep.mubr.msk.f32.mxu1 %vm3537_vm6, %v3533_v1 }
 0x108   : > { %3115 = vmatprep.subr.mxu1 %v3533_v1 }
 0x10a   : > { %3113 = vmatmul.mubr.msk.f32.vlgmr.msra.gmra.mrb[4].mxu1 %vm398_vm3, %v382_v9 }
 0x10b   : > { %3116 = vmatpush3.msk.msra.mxu1 %vm402_vm2, %v3283_v17  ;;  %3117 = vmatprep.mubr.msk.f32.mxu1 %vm3537_vm6, %v3533_v1 }
 0x10c   : > { %3120 = vmatprep.subr.mxu1 %v3533_v1 }
 0x10d   : > { %v865_v27 = vpop.permute.xlu0 %864 }
 0x10e   : > { %3118 = vmatmul.mubr.msk.f32.vlgmr.msra.gmra.mrb[6].mxu1 %vm398_vm3, %v384_v25 }
 0x10f   : > { %3122 = vmatprep.mubr.msk.f32.mxu1 %vm3537_vm6, %v3533_v1 }
 0x1d5   : > { %v475_v26 = vpop.f32.mrb[0].mxu1 }
 0x1d6   : > { %v784_v28 = vpop.f32.mrb[0].mxu0  ;;  %v477_v29 = vpop.f32.mrb[1].mxu1 }
 0x1d7   : > { %v3150_v30 = vadd.f32 %v784_v28, %v475_v26  ;;  %v786_v31 = vpop.f32.mrb[1].mxu0 }
 0x1d8   : > { %v3151_v32 = vadd.f32 %v786_v31, %v477_v29 }
 0x1d9   : > { %v867_v33 = vadd.f32 %v3150_v30, %v865_v27  ;;  %v546_v34 = vpop.f32.mrb[2].mxu1 }
 0x1da   : > { %v868_v35 = vadd.f32 %v3151_v32, %v865_v27  ;;  %v3109_v36 = vpop.f32.mrb[3].mxu1 }
 0x1db   : > { %vm870_vm7 = vcmp.ge.f32.partialorder %v867_v33, 0.0  ;;  %v873_v37 = vmul.f32 0.1, %v867_v33 }
 0x1dc   : > { %v874_v39 = vmul.f32 0.1, %v868_v35  ;;  %vm871_vm8 = vcmp.ge.f32.partialorder %v868_v35, 0.0 }
 0x1dd   : > { %v876_v38 = vsel %vm870_vm7, %v867_v33, %v873_v37  ;;  %v696_v40 = vpop.f32.mrb[4].mxu1  ;;  %vm2143_vm7 = vcmask 990208  }
 0x1de   : > { %882 = vrot.lane.b32.xlu1 %v876_v38, %s3538_s28  ;;  %v3114_v41 = vpop.f32.mrb[5].mxu1  ;;  %v877_v42 = vsel %vm871_vm8, %v868_v35, %v874_v39  ;;  %vm2242_vm8 = vcmask 1014784  }
 0x1df   : > { %v3031_v41 = vld [vmem:[%s4136_s2 + $0x10] sm:$0xf] }
 0x1e1   : > { %v855_v43 = vpop.f32.mrb[6].mxu1 }
 0x1e2   : > { %884 = vrot.lane.b32.xlu1 %v877_v42, %s3538_s28  ;;  %v3119_v44 = vpop.f32.mrb[7].mxu1  ;;  %s3544_s28 = smov 122  }
 0x1e3   : > { %v3030_v44 = vld [vmem:[%s4136_s2 + $0xc] sm:$0xf] }
 0x1e6   : > { %3287 = vrot.lane.b32.xlu1 %v3533_v1, %s3534_s27 }
 0x1ea   : > { %3292 = vrot.lane.b32.xlu1 %v3533_v1, %s3535_s29 }
 0x1ee   : > { %3297 = vrot.lane.b32.xlu1 %v3533_v1, %s3539_s12 }
 0x1f2   : > { %1391 = vrot.lane.b32.xlu1 %v342_v45, %s3534_s27  ;;  %v3033_v45 = vld [vmem:[%s4137_s3 + $0x4] sm:$0xf] }
 0x1f6   : > { %1395 = vrot.lane.b32.xlu1 %v345_v46, %s3534_s27 }
 0x250   : > { %v883_v47 = vpop.permute.xlu1 %882 }
 0x254   : > { %v885_v48 = vpop.permute.xlu1 %884 }
 0x255   : > { %v889_v49 = vsel %vm888_vm9, %v883_v47, %v885_v48  ;;  %v3032_v48 = vld [vmem:[%s4136_s2 + $0x14] sm:$0xf] }
 0x256   : > { %v895_v50 = vsel %vm359_vm0, %v889_v49, 0.0 }
 0x257   : > { %906 = vrot.lane.b32.xlu0 %v895_v50, %s3534_s27 }
 0x258   : > { %v3288_v51 = vpop.permute.xlu1 %3287 }
 0x259   : > { %v3289_v52 = vunpack.i.l.bf16 %v3288_v51  ;;  %v3290_v61 = vunpack.i.h.bf16 %v3288_v51 }
 0x25b   : > { %1064 = vrot.lane.b32.xlu0 %v895_v50, %s3535_s29  ;;  %3121 = vmatpush3.msk.msra.mxu1 %vm402_vm2, %v3289_v52  ;;  %s3542_s29 = smov 120  }
 0x25c   : > { %v3293_v54 = vpop.permute.xlu1 %3292  ;;  %3123 = vmatmul.mubr.msk.f32.vlgmr.msra.gmra.mrb[8].mxu1 %vm398_vm3, %v898_v53  ;;  %3125 = vmatprep.subr.mxu1 %v3533_v1 }
 0x25d   : > { %v3294_v55 = vunpack.i.l.bf16 %v3293_v54  ;;  %3127 = vmatprep.mubr.msk.f32.mxu1 %vm3537_vm6, %v3533_v1  ;;  %v3295_v63 = vunpack.i.h.bf16 %v3293_v54 }
 0x25f   : > { %1222 = vrot.lane.b32.xlu0 %v895_v50, %s3539_s12  ;;  %3126 = vmatpush3.msk.msra.mxu1 %vm402_vm2, %v3294_v55  ;;  %s3545_s12 = smov 121  }
 0x260   : > { %v3298_v57 = vpop.permute.xlu1 %3297  ;;  %3128 = vmatmul.mubr.msk.f32.vlgmr.msra.gmra.mrb[10].mxu1 %vm398_vm3, %v897_v56  ;;  %3130 = vmatprep.subr.mxu1 %v3533_v1 }
 0x261   : > { %v3299_v59 = vunpack.i.l.bf16 %v3298_v57  ;;  %3132 = vmatprep.mubr.msk.f32.mxu1 %vm3537_vm6, %v3533_v1 }
 0x263   : > { %1384 = vperm.xlu0 %3285, %v900_v58   ;;  %3131 = vmatpush3.msk.msra.mxu1 %vm402_vm2, %v3299_v59 }
 0x264   : > { %3133 = vmatmul.mubr.msk.f32.vlgmr.msra.gmra.mrb[12].mxu1 %vm398_vm3, %v899_v60  ;;  %3135 = vmatprep.subr.mxu1 %v3533_v1  ;;  %v1392_v19 = vpop.permute.xlu1 %1391 }
 0x265   : > { %3137 = vmatprep.mubr.msk.f32.mxu1 %vm3537_vm6, %v3533_v1 }
 0x267   : > { %1393 = vrot.lane.b32.xlu0 %v3796_v5, %s3534_s27  ;;  %v3300_v5 = vunpack.i.h.bf16 %v3298_v57 }
 0x268   : > { %v3907_v22 = vpop.permute.xlu1 %1395 }
 0x2c9   : > { %v907_v62 = vpop.permute.xlu0 %906 }
 0x2ca   : > { %v910_v0 = vsel %vm706_vm5, %v3290_v61, %v907_v62  ;;  %v911_v2 = vsel %vm706_vm5, %v907_v62, %v3289_v52 }
 0x2cb   : > { %3015 = vmatprep.subr.msk.mxu0 %vm402_vm2, %v911_v2 }
 0x2cc   : > { %3016 = vmatpush1.msk.msra.mxu0 %vm402_vm2, %v910_v0 }
 0x2cd   : > { %v1065_v3 = vpop.permute.xlu0 %1064  ;;  %3017 = vmatmul.mubr.msk.f32.vlgmr.msra.gmra.mrb[2].mxu0 %vm398_vm3, %v898_v53 }
 0x2ce   : > { %v1068_v6 = vsel %vm395_vm4, %v3295_v63, %v1065_v3  ;;  %v1069_v7 = vsel %vm395_vm4, %v1065_v3, %v3294_v55  ;;  %1143 = vmatprep.mubr.f32.mxu0 %v3533_v1 }
 0x2cf   : > { %3020 = vmatprep.subr.msk.mxu0 %vm402_vm2, %v1069_v7 }
 0x2d0   : > { %3021 = vmatpush1.msk.msra.mxu0 %vm402_vm2, %v1068_v6 }
 0x2d1   : > { %v1223_v8 = vpop.permute.xlu0 %1222 }
 0x2d2   : > { %v1228_v9 = vsel %vm1226_vm10, %v1223_v8, %v3299_v59  ;;  %v1227_v10 = vsel %vm1226_vm10, %v3300_v5, %v1223_v8 }
 0x2d3   : > { %3025 = vmatprep.subr.msk.mxu0 %vm402_vm2, %v1228_v9 }
 0x2d5   : > { %3022 = vmatmul.mubr.msk.f32.vlgmr.msra.gmra.mrb[2].mxu0 %vm398_vm3, %v897_v56 }
 0x2d6   : > { %3026 = vmatpush1.msk.msra.mxu0 %vm402_vm2, %v1227_v10  ;;  %1302 = vmatprep.mubr.f32.mxu0 %v3533_v1 }
 0x2dd   : > { %3027 = vmatmul.mubr.msk.f32.vlgmr.msra.gmra.mrb[2].mxu0 %vm398_vm3, %v899_v60 }
 0x2de   : > { %1523 = vmatprep.mubr.f32.mxu0 %v3533_v1 }
 0x2e2   : > { %v3905_v20 = vpop.permute.xlu0 %1384 }
 0x2e6   : > { %v1394_v21 = vpop.permute.xlu0 %1393 }
 0x2e7   : > { %v1398_v25 = vsel %vm706_vm5, %v1394_v21, %v3907_v22  ;;  %v1397_v27 = vsel %vm706_vm5, %v1392_v19, %v1394_v21 }
 0x32f   : > { %v1058_v11 = vpop.f32.mrb[8].mxu1 }
 0x330   : > { %v3124_v12 = vpop.f32.mrb[9].mxu1 }
 0x333   : > { %v1216_v13 = vpop.f32.mrb[10].mxu1 }
 0x334   : > { %v1217_v14 = vadd.f32 %v1216_v13, %v1058_v11  ;;  %v3129_v15 = vpop.f32.mrb[11].mxu1 }
 0x337   : > { %v1375_v16 = vpop.f32.mrb[12].mxu1 }
 0x338   : > { %v3903_v17 = vadd.f32 %v1375_v16, %v1217_v14  ;;  %v3134_v18 = vpop.f32.mrb[13].mxu1 }
 0x33a   : > { %v1389_v14 = vadd.f32 %v3905_v20, %v3903_v17  ;;  %v3049_v17 = vld [vmem:[%s4139_s5 + $0x4] sm:$0xf] }
 0x33c   : > { %v1404_v15 = vadd.f32 %v3907_v22, %v1389_v14 }
 0x3b0   : > { %v1304_v23 = vpop.f32.mrb[2].mxu0 }
 0x3b1   : > { %v1387_v24 = vadd.f32 %v3905_v20, %v1304_v23  ;;  %v1306_v26 = vpop.f32.mrb[3].mxu0 }
 0x3b2   : > { %v1388_v28 = vadd.f32 %v3905_v20, %v1306_v26 }
 0x3b3   : > { %v3914_v29 = vadd.f32 %v1397_v27, %v1387_v24 }
 0x3b4   : > { %v3916_v30 = vadd.f32 %v1398_v25, %v1388_v28 }
 0x3b5   : > { %vm1405_vm11 = vcmp.ge.f32.partialorder %v3914_v29, 0.0  ;;  %v1408_v31 = vmul.f32 0.1, %v3914_v29 }
 0x3b6   : > { %vm1406_vm12 = vcmp.ge.f32.partialorder %v3916_v30, 0.0  ;;  %v1409_v32 = vmul.f32 0.1, %v3916_v30 }
 0x3b7   : > { %v1411_v33 = vsel %vm1405_vm11, %v3914_v29, %v1408_v31  ;;  %v1957_v31 = vld [vmem:[#allocation7 + $0x10] sm:$0xf]  ;;  %vm2261_vm11 = vcmask 48128  }
 0x3b8   : > { %1417 = vrot.lane.b32.xlu0 %v1411_v33, %s3540_s15  ;;  %v1412_v34 = vsel %vm1406_vm12, %v3916_v30, %v1409_v32  ;;  %vm2284_vm12 = vcmask 957440  }
 0x3b9   : > { %1419 = vrot.lane.b32.xlu1 %v1412_v34, %s3540_s15 }
 0x3bd   : > { %3302 = vrot.lane.b32.xlu1 %v3533_v1, %s3541_s16 }
 0x3c1   : > { %3307 = vrot.lane.b32.xlu1 %v3533_v1, %s3534_s27 }
 0x3c5   : > { %3312 = vrot.lane.b32.xlu1 %v3533_v1, %s3542_s29 }
 0x42a   : > { %v1418_v35 = vpop.permute.xlu0 %1417 }
 0x42b   : > { %v1420_v36 = vpop.permute.xlu1 %1419 }
 0x42c   : > { %v1424_v37 = vsel %vm1423_vm13, %v1418_v35, %v1420_v36  ;;  %vm2454_vm13 = vcmask 916480  }
 0x42d   : > { %v1430_v38 = vsel %vm359_vm0, %v1424_v37, 0.0 }
 0x42e   : > { %1443 = vrot.lane.b32.xlu0 %v1430_v38, %s3541_s16 }
 0x42f   : > { %v3303_v39 = vpop.permute.xlu1 %3302 }
 0x430   : > { %v3304_v40 = vunpack.i.l.bf16 %v3303_v39  ;;  %v3305_v49 = vunpack.i.h.bf16 %v3303_v39  ;;  %v1956_v39 = vld [vmem:[#allocation7 + $0xc] sm:$0xf] }
 0x432   : > { %1602 = vrot.lane.b32.xlu0 %v1430_v38, %s3534_s27  ;;  %3136 = vmatpush3.msk.msra.mxu1 %vm402_vm2, %v3304_v40 }
 0x433   : > { %v3308_v42 = vpop.permute.xlu1 %3307  ;;  %3140 = vmatprep.subr.mxu1 %v3533_v1  ;;  %3138 = vmatmul.mubr.msk.f32.vlgmr.msra.gmra.mrb[14].mxu1 %vm398_vm3, %v3031_v41 }
 0x434   : > { %v3309_v43 = vunpack.i.l.bf16 %v3308_v42  ;;  %3142 = vmatprep.mubr.msk.f32.mxu1 %vm3537_vm6, %v3533_v1  ;;  %v3310_v53 = vunpack.i.h.bf16 %v3308_v42 }
 0x436   : > { %1760 = vrot.lane.b32.xlu0 %v1430_v38, %s3542_s29  ;;  %3141 = vmatpush3.msk.msra.mxu1 %vm402_vm2, %v3309_v43  ;;  %s3548_s29 = smov 117  }
 0x437   : > { %v3313_v46 = vpop.permute.xlu1 %3312  ;;  %3145 = vmatprep.subr.mxu1 %v3533_v1  ;;  %3143 = vmatmul.mubr.msk.f32.vlgmr.msra.gmra.mrb[16].mxu1 %vm398_vm3, %v3030_v44 }
 0x438   : > { %v3314_v47 = vunpack.i.l.bf16 %v3313_v46  ;;  %3147 = vmatprep.mubr.msk.f32.mxu1 %vm3537_vm6, %v3533_v1  ;;  %v3315_v57 = vunpack.i.h.bf16 %v3313_v46  ;;  %vm1970_vm6 = vcmask 998400  }
 0x43a   : > { %1922 = vperm.xlu0 %3285, %v3033_v45   ;;  %3146 = vmatpush3.msk.msra.mxu1 %vm402_vm2, %v3314_v47 }
 0x43b   : > { %3148 = vmatmul.mubr.msk.f32.vlgmr.msra.gmra.mrb[18].mxu1 %vm398_vm3, %v3032_v48 }
 0x43c   : > { %2358 = vmatprep.mubr.f32.mxu1 %v3533_v1 }
 0x4a0   : > { %v1444_v50 = vpop.permute.xlu0 %1443 }
 0x4a1   : > { %v1448_v51 = vsel %vm1447_vm14, %v3305_v49, %v1444_v50  ;;  %v1449_v52 = vsel %vm1447_vm14, %v1444_v50, %v3304_v40 }
 0x4a2   : > { %3034 = vmatprep.subr.msk.mxu0 %vm402_vm2, %v1449_v52 }
 0x4a3   : > { %3035 = vmatpush1.msk.msra.mxu0 %vm402_vm2, %v1448_v51 }
 0x4a4   : > { %v1603_v54 = vpop.permute.xlu0 %1602  ;;  %3036 = vmatmul.mubr.msk.f32.vlgmr.msra.gmra.mrb[4].mxu0 %vm398_vm3, %v3031_v41  ;;  %v1958_v41 = vld [vmem:[#allocation7 + $0x14] sm:$0xf] }
 0x4a5   : > { %v1606_v55 = vsel %vm706_vm5, %v3310_v53, %v1603_v54  ;;  %v1607_v56 = vsel %vm706_vm5, %v1603_v54, %v3309_v43  ;;  %1681 = vmatprep.mubr.f32.mxu0 %v3533_v1  ;;  %vm1946_vm5 = vcmask 39936  }
 0x4a6   : > { %3039 = vmatprep.subr.msk.mxu0 %vm402_vm2, %v1607_v56 }
 0x4a7   : > { %3040 = vmatpush1.msk.msra.mxu0 %vm402_vm2, %v1606_v55 }
 0x4a8   : > { %v1761_v58 = vpop.permute.xlu0 %1760 }
 0x4a9   : > { %v1766_v59 = vsel %vm1764_vm15, %v1761_v58, %v3314_v47  ;;  %v1765_v60 = vsel %vm1764_vm15, %v3315_v57, %v1761_v58 }
 0x4aa   : > { %3044 = vmatprep.subr.msk.mxu0 %vm402_vm2, %v1766_v59 }
 0x4ac   : > { %3041 = vmatmul.mubr.msk.f32.vlgmr.msra.gmra.mrb[4].mxu0 %vm398_vm3, %v3030_v44 }
 0x4ad   : > { %3045 = vmatpush1.msk.msra.mxu0 %vm402_vm2, %v1765_v60  ;;  %1840 = vmatprep.mubr.f32.mxu0 %v3533_v1 }
 0x4b4   : > { %3046 = vmatmul.mubr.msk.f32.vlgmr.msra.gmra.mrb[4].mxu0 %vm398_vm3, %v3032_v48 }
 0x4b5   : > { %2044 = vmatprep.mubr.f32.mxu0 %v3533_v1 }
 0x4b9   : > { %v1923_v6 = vpop.permute.xlu0 %1922 }
 0x506   : > { %v1596_v61 = vpop.f32.mrb[14].mxu1 }
 0x507   : > { %v3139_v62 = vpop.f32.mrb[15].mxu1 }
 0x508   : > { %v3062_v62 = vld [vmem:[%s4137_s3 + $0x8] sm:$0xf] }
 0x50a   : > { %v1754_v63 = vpop.f32.mrb[16].mxu1 }
 0x50b   : > { %v3144_v0 = vpop.f32.mrb[17].mxu1 }
 0x50e   : > { %v1913_v2 = vpop.f32.mrb[18].mxu1 }
 0x50f   : > { %v3149_v3 = vpop.f32.mrb[19].mxu1 }
 0x587   : > { %v1842_v7 = vpop.f32.mrb[4].mxu0 }
 0x588   : > { %v1925_v5 = vadd.f32 %v1923_v6, %v1842_v7  ;;  %v1844_v8 = vpop.f32.mrb[5].mxu0 }
 0x589   : > { %v1926_v9 = vadd.f32 %v1923_v6, %v1844_v8  ;;  %v3060_v8 = vld [vmem:[%s4136_s2 + $0x1c] sm:$0xf] }
 0x58a   : > { %v1931_v10 = vmul.f32 0.1, %v1925_v5  ;;  %vm1928_vm1 = vcmp.ge.f32.partialorder %v1925_v5, 0.0 }
 0x58b   : > { %v1932_v11 = vmul.f32 0.1, %v1926_v9  ;;  %vm1929_vm4 = vcmp.ge.f32.partialorder %v1926_v9, 0.0 }
 0x58c   : > { %v1934_v12 = vsel %vm1928_vm1, %v1925_v5, %v1931_v10  ;;  %vm2556_vm1 = vcmask 89088  }
 0x58d   : > { %1940 = vrot.lane.b32.xlu1 %v1934_v12, %s3543_s13  ;;  %v1935_v13 = vsel %vm1929_vm4, %v1926_v9, %v1932_v11  ;;  %vm2746_vm4 = vcmask 941056  }
 0x58e   : > { %1942 = vrot.lane.b32.xlu0 %v1935_v13, %s3543_s13 }
 0x592   : > { %3317 = vrot.lane.b32.xlu0 %v3533_v1, %s3544_s28 }
 0x596   : > { %3322 = vrot.lane.b32.xlu0 %v3533_v1, %s3541_s16 }
 0x59a   : > { %3327 = vrot.lane.b32.xlu0 %v3533_v1, %s3545_s12 }
 0x59e   : > { %2236 = vrot.lane.b32.xlu0 %v3914_v29, %s3546_s0 }
 0x5a2   : > { %2240 = vrot.lane.b32.xlu0 %v1404_v15, %s3546_s0 }
 0x5ff   : > { %v1941_v16 = vpop.permute.xlu1 %1940 }
 0x600   : > { %v1943_v18 = vpop.permute.xlu0 %1942 }
 0x601   : > { %v1947_v19 = vsel %vm1946_vm5, %v1941_v16, %v1943_v18  ;;  %v3059_v16 = vld [vmem:[%s4136_s2 + $0x18] sm:$0xf] }
 0x602   : > { %v1953_v21 = vsel %vm359_vm0, %v1947_v19, 0.0  ;;  %v3061_v19 = vld [vmem:[%s4136_s2 + $0x20] sm:$0xf] }
 0x603   : > { %1966 = vrot.lane.b32.xlu1 %v1953_v21, %s3544_s28 }
 0x604   : > { %v3318_v20 = vpop.permute.xlu0 %3317 }
 0x605   : > { %v3320_v22 = vunpack.i.h.bf16 %v3318_v20  ;;  %v3319_v23 = vunpack.i.l.bf16 %v3318_v20 }
 0x607   : > { %2053 = vrot.lane.b32.xlu1 %v1953_v21, %s3541_s16  ;;  %s3547_s16 = smov 6  }
 0x608   : > { %v3323_v24 = vpop.permute.xlu0 %3322 }
 0x609   : > { %v3325_v26 = vunpack.i.h.bf16 %v3323_v24  ;;  %v3324_v27 = vunpack.i.l.bf16 %v3323_v24 }
 0x60b   : > { %2139 = vrot.lane.b32.xlu1 %v1953_v21, %s3545_s12  ;;  %s3550_s12 = smov 11  }
 0x60c   : > { %v3328_v32 = vpop.permute.xlu0 %3327 }
 0x60d   : > { %v3330_v36 = vunpack.i.h.bf16 %v3328_v32 }
 0x60f   : > { %2228 = vperm.xlu1 %3331, %v3049_v17  }
 0x610   : > { %v2237_v43 = vpop.permute.xlu0 %2236 }
 0x613   : > { %2238 = vrot.lane.b32.xlu1 %v3916_v30, %s3546_s0  ;;  %v3329_v30 = vunpack.i.l.bf16 %v3328_v32  ;;  %s3551_s0 = smov 116  }
 0x614   : > { %v2241_v48 = vpop.permute.xlu0 %2240 }
 0x675   : > { %v1967_v25 = vpop.permute.xlu1 %1966 }
 0x676   : > { %v1971_v28 = vsel %vm1970_vm6, %v3320_v22, %v1967_v25  ;;  %v1972_v29 = vsel %vm1970_vm6, %v1967_v25, %v3319_v23 }
 0x677   : > { %3050 = vmatprep.subr.msk.mxu0 %vm402_vm2, %v1972_v29 }
 0x678   : > { %3051 = vmatpush1.msk.msra.mxu0 %vm402_vm2, %v1971_v28 }
 0x679   : > { %v2054_v33 = vpop.permute.xlu1 %2053  ;;  %3052 = vmatmul.mubr.msk.f32.vlgmr.msra.gmra.mrb[6].mxu0 %vm398_vm3, %v1957_v31 }
 0x67a   : > { %v2057_v34 = vsel %vm1447_vm14, %v3325_v26, %v2054_v33  ;;  %v2058_v35 = vsel %vm1447_vm14, %v2054_v33, %v3324_v27  ;;  %2130 = vmatprep.mubr.f32.mxu0 %v3533_v1  ;;  %v3072_v33 = vld [vmem:[%s4139_s5 + $0x8] sm:$0xf] }
 0x67b   : > { %3053 = vmatprep.subr.msk.mxu0 %vm402_vm2, %v2058_v35 }
 0x67c   : > { %3054 = vmatpush1.msk.msra.mxu0 %vm402_vm2, %v2057_v34  ;;  %v2566_v34 = vld [vmem:[#allocation7 + $0x1c] sm:$0xf] }
 0x67d   : > { %v2140_v37 = vpop.permute.xlu1 %2139 }
 0x67e   : > { %v2145_v38 = vsel %vm2143_vm7, %v2140_v37, %v3329_v30  ;;  %v2144_v40 = vsel %vm2143_vm7, %v3330_v36, %v2140_v37 }
 0x67f   : > { %3056 = vmatprep.subr.msk.mxu0 %vm402_vm2, %v2145_v38 }
 0x681   : > { %3055 = vmatmul.mubr.msk.f32.vlgmr.msra.gmra.mrb[6].mxu0 %vm398_vm3, %v1956_v39 }
 0x682   : > { %3057 = vmatpush1.msk.msra.mxu0 %vm402_vm2, %v2144_v40  ;;  %2217 = vmatprep.mubr.f32.mxu0 %v3533_v1  ;;  %v2565_v40 = vld [vmem:[#allocation7 + $0x18] sm:$0xf] }
 0x689   : > { %3058 = vmatmul.mubr.msk.f32.vlgmr.msra.gmra.mrb[6].mxu0 %vm398_vm3, %v1958_v41 }
 0x68a   : > { %2649 = vmatprep.mubr.f32.mxu0 %v3533_v1 }
 0x68e   : > { %v2229_v42 = vpop.permute.xlu1 %2228 }
 0x692   : > { %v2239_v44 = vpop.permute.xlu1 %2238 }
 0x693   : > { %v2243_v49 = vsel %vm2242_vm8, %v2237_v43, %v2239_v44  ;;  %v2244_v51 = vsel %vm2242_vm8, %v2239_v44, %v2241_v48 }
 0x75c   : > { %v2219_v45 = vpop.f32.mrb[6].mxu0 }
 0x75d   : > { %v2231_v46 = vadd.f32 %v2229_v42, %v2219_v45  ;;  %v2221_v47 = vpop.f32.mrb[7].mxu0 }
 0x75e   : > { %v2232_v50 = vadd.f32 %v2229_v42, %v2221_v47 }
 0x75f   : > { %v4007_v52 = vadd.f32 %v2243_v49, %v2231_v46  ;;  %v2567_v46 = vld [vmem:[#allocation7 + $0x20] sm:$0xf] }
 0x760   : > { %v4009_v53 = vadd.f32 %v2244_v51, %v2232_v50 }
 0x761   : > { %vm2249_vm9 = vcmp.ge.f32.partialorder %v4007_v52, 0.0  ;;  %v2251_v54 = vmul.f32 0.1, %v4007_v52 }
 0x762   : > { %vm2250_vm10 = vcmp.ge.f32.partialorder %v4009_v53, 0.0  ;;  %v2252_v55 = vmul.f32 0.1, %v4009_v53 }
 0x763   : > { %v2253_v56 = vsel %vm2249_vm9, %v4007_v52, %v2251_v54 }
 0x764   : > { %2257 = vrot.lane.b32.xlu1 %v2253_v56, %s3547_s16  ;;  %v2254_v57 = vsel %vm2250_vm10, %v4009_v53, %v2252_v55 }
 0x765   : > { %2259 = vrot.lane.b32.xlu0 %v2254_v57, %s3547_s16 }
 0x769   : > { %3333 = vrot.lane.b32.xlu0 %v3533_v1, %s3548_s29 }
 0x7d6   : > { %v2258_v58 = vpop.permute.xlu1 %2257 }
 0x7d7   : > { %v2260_v59 = vpop.permute.xlu0 %2259 }
 0x7d8   : > { %v2262_v60 = vsel %vm2261_vm11, %v2258_v58, %v2260_v59 }
 0x7d9   : > { %v2267_v61 = vsel %vm359_vm0, %v2262_v60, 0.0 }
 0x7da   : > { %2367 = vrot.lane.b32.xlu0 %v2267_v61, %s3544_s28  ;;  %2280 = vrot.lane.b32.xlu1 %v2267_v61, %s3548_s29 }
 0x7db   : > { %v3334_v63 = vpop.permute.xlu0 %3333 }
 0x7dc   : > { %v3336_v0 = vunpack.i.h.bf16 %v3334_v63  ;;  %v3335_v2 = vunpack.i.l.bf16 %v3334_v63 }
 0x7de   : > { %2365 = vrot.lane.b32.xlu1 %v3533_v1, %s3544_s28  ;;  %3338 = vrot.lane.b32.xlu0 %v3533_v1, %s3549_s20 }
 0x7e2   : > { %2450 = vrot.lane.b32.xlu1 %v2267_v61, %s3549_s20  ;;  %s339_s20 = scalar_lea.vmem [#allocation8], %s2998_s11  ;;  %s3554_s11 = smov [#allocation8]  }
 0x7e3   : > { %s2872_s19 = sshll.u32 %s339_s20, 4  ;;  %s3440_s14 = sshll.u32 %s3554_s11, 4  ;;  %s4087_s19 = int_to_ptr.vmem [resolvable:$true] %s2872_s19  ;;  %s3441_s14 = int_to_ptr.vmem [resolvable:$false] %s3440_s14 }
 0x7e4   : > { %s3442_s8 = scalar_lea.vmem %s3441_s14, 128  ;;  %p3443_p1 = scmp.lt.s32.totalorder %s4087_s19, %s3441_s14 }
 0x7e6   : > { %2539 = vperm.xlu1 %3331, %v3062_v62  }
 0x84c   : > { %v2281_v3 = vpop.permute.xlu1 %2280  ;;  %v2368_v6 = vpop.permute.xlu0 %2367 }
 0x84d   : > { %v2285_v7 = vsel %vm2284_vm12, %v3336_v0, %v2281_v3  ;;  %v2286_v5 = vsel %vm2284_vm12, %v2281_v3, %v3335_v2 }
 0x84e   : > { %3063 = vmatprep.subr.msk.mxu1 %vm402_vm2, %v2286_v5 }
 0x84f   : > { %3064 = vmatpush1.msk.msra.mxu1 %vm402_vm2, %v2285_v7 }
 0x850   : > { %v2366_v9 = vpop.permute.xlu1 %2365  ;;  %3065 = vmatmul.mubr.msk.f32.vlgmr.msra.gmra.mrb[20].mxu1 %vm398_vm3, %v3060_v8  ;;  %3066 = vmatprep.subr.msk.mxu1 %vm402_vm2, %v2368_v6  ;;  %v3339_v10 = vpop.permute.xlu0 %3338 }
 0x851   : > { %v2369_v11 = vsel %vm1970_vm6, %v2366_v9, %v2368_v6  ;;  %v3340_v12 = vunpack.i.l.bf16 %v3339_v10  ;;  %2441 = vmatprep.mubr.f32.mxu1 %v3533_v1  ;;  %v3341_v13 = vunpack.i.h.bf16 %v3339_v10 }
 0x852   : > { %3067 = vmatpush1.msk.msra.mxu1 %vm402_vm2, %v2369_v11 }
 0x854   : > { %v2451_v14 = vpop.permute.xlu1 %2450 }
 0x855   : > { %v2456_v15 = vsel %vm2454_vm13, %v2451_v14, %v3340_v12  ;;  %v2455_v18 = vsel %vm2454_vm13, %v3341_v13, %v2451_v14 }
 0x856   : > { %3069 = vmatprep.subr.msk.mxu1 %vm402_vm2, %v2456_v15 }
 0x858   : > { %3068 = vmatmul.mubr.msk.f32.vlgmr.msra.gmra.mrb[20].mxu1 %vm398_vm3, %v3059_v16 }
 0x859   : > { %3070 = vmatpush1.msk.msra.mxu1 %vm402_vm2, %v2455_v18  ;;  %2528 = vmatprep.mubr.f32.mxu1 %v3533_v1 }
 0x860   : > { %3071 = vmatmul.mubr.msk.f32.vlgmr.msra.gmra.mrb[20].mxu1 %vm398_vm3, %v3061_v19 }
 0x865   : > { %v2540_v21 = vpop.permute.xlu1 %2539 }
 0x933   : > { %v2530_v17 = vpop.f32.mrb[20].mxu1 }
 0x934   : > { %v2542_v20 = vadd.f32 %v2540_v21, %v2530_v17  ;;  %v2532_v22 = vpop.f32.mrb[21].mxu1 }
 0x935   : > { %v2543_v23 = vadd.f32 %v2540_v21, %v2532_v22 }
 0x936   : > { %v2546_v24 = vmul.f32 0.1, %v2542_v20  ;;  %vm2544_vm14 = vcmp.ge.f32.partialorder %v2542_v20, 0.0 }
 0x937   : > { %v2547_v25 = vmul.f32 0.1, %v2543_v23  ;;  %vm2545_vm15 = vcmp.ge.f32.partialorder %v2543_v23, 0.0 }
 0x938   : > { %v2548_v26 = vsel %vm2544_vm14, %v2542_v20, %v2546_v24 }
 0x939   : > { %2552 = vrot.lane.b32.xlu0 %v2548_v26, %s3550_s12  ;;  %v2549_v27 = vsel %vm2545_vm15, %v2543_v23, %v2547_v25 }
 0x93a   : > { %2554 = vrot.lane.b32.xlu1 %v2549_v27, %s3550_s12 }
 0x93d   : > { %2572 = vrot.lane.b32.xlu0 %v3533_v1, %s3551_s0 }
 0x941   : > { %2656 = vrot.lane.b32.xlu0 %v3533_v1, %s3548_s29 }
 0x9ab   : > { %v2553_v28 = vpop.permute.xlu0 %2552 }
 0x9ac   : > { %v2555_v29 = vpop.permute.xlu1 %2554 }
 0x9ad   : > { %v2557_v31 = vsel %vm2556_vm1, %v2553_v28, %v2555_v29 }
 0x9ae   : > { %v2562_v32 = vsel %vm359_vm0, %v2557_v31, 0.0  ;;  %vm2576_vm0 = vcmask 949248  }
 0x9af   : > { %2742 = vrot.lane.b32.xlu0 %v2562_v32, %s3552_s7  ;;  %2574 = vrot.lane.b32.xlu1 %v2562_v32, %s3551_s0  ;;  %v2573_v4 = vpop.permute.xlu0 %2572 }
 0x9b3   : > { %2831 = vperm.xlu0 %3285, %v3072_v33   ;;  %2658 = vrot.lane.b32.xlu1 %v2562_v32, %s3548_s29  ;;  %v2657_v36 = vpop.permute.xlu0 %2656  ;;  %s3083_s29 = sshll.u32 %s3518_s24, 6  ;;  %s3436_s24 = scalar_lea.vmem %s4087_s19, 64 }
 0x9b4   : > { %s4085_s18 = scalar_lea.hbm %s4140_s6, %s3083_s29  ;;  %p3437_p12 = scmp.ne.s32.totalorder %s4087_s19, %s3436_s24 }
 0x9b5   : > { %p3444_p2 = scmp.lt.s32.totalorder %s3442_s8, %s3436_s24 }
 0x9b6   : > { %p3438_p5 = pnand %p3437_p12, %p4165_p0 }
 0x9b7   : > { %2840 = vrot.lane.b32.xlu0 %v4009_v53, %s3544_s28  ;;  %3343 = vrot.lane.b32.xlu1 %v3533_v1, %s3552_s7  ;;  %p3445_p7 = por %p3444_p2, %p3443_p1 }
 0x9b8   : > { %p3439_p9 = pneg %p3438_p5 }
 0x9ba   : > { %p3446_p4 = pnand %p3445_p7, %p3439_p9 }
 0x9bb   : > { %2838 = vrot.lane.b32.xlu1 %v4007_v52, %s3544_s28  ;;  %s3553_s28 = smov 12  }
 0xa21   : > { %v2575_v30 = vpop.permute.xlu1 %2574  ;;  %v2743_v43 = vpop.permute.xlu0 %2742 }
 0xa22   : > { %v2577_v35 = vsel %vm2576_vm0, %v2573_v4, %v2575_v30  ;;  %3073 = vmatprep.subr.msk.mxu0 %vm402_vm2, %v2575_v30 }
 0xa23   : > { %3074 = vmatpush1.msk.msra.mxu0 %vm402_vm2, %v2577_v35 }
 0xa24   : > { %3075 = vmatmul.mubr.msk.f32.vlgmr.msra.gmra.mrb[8].mxu0 %vm398_vm3, %v2566_v34 }
 0xa25   : > { %v2659_v37 = vpop.permute.xlu1 %2658  ;;  %2732 = vmatprep.mubr.f32.mxu0 %v3533_v1 }
 0xa26   : > { %v2660_v38 = vsel %vm2284_vm12, %v2657_v36, %v2659_v37  ;;  %3076 = vmatprep.subr.msk.mxu0 %vm402_vm2, %v2659_v37 }
 0xa27   : > { %3077 = vmatpush1.msk.msra.mxu0 %vm402_vm2, %v2660_v38 }
 0xa29   : > { %v3344_v39 = vpop.permute.xlu1 %3343 }
 0xa2a   : > { %v3346_v41 = vunpack.i.h.bf16 %v3344_v39  ;;  %v3345_v42 = vunpack.i.l.bf16 %v3344_v39 }
 0xa2c   : > { %3078 = vmatmul.mubr.msk.f32.vlgmr.msra.gmra.mrb[8].mxu0 %vm398_vm3, %v2565_v40  ;;  %v2748_v44 = vsel %vm2746_vm4, %v2743_v43, %v3345_v42  ;;  %v2747_v45 = vsel %vm2746_vm4, %v3346_v41, %v2743_v43 }
 0xa2d   : > { %3079 = vmatprep.subr.msk.mxu0 %vm402_vm2, %v2748_v44  ;;  %2820 = vmatprep.mubr.f32.mxu0 %v3533_v1  ;;  %v2839_v50 = vpop.permute.xlu1 %2838 }
 0xa2e   : > { %3080 = vmatpush1.msk.msra.mxu0 %vm402_vm2, %v2747_v45  ;;  %vm2853_vm2 = vcmask 97280  }
 0xa32   : > { %v2832_v47 = vpop.permute.xlu0 %2831 }
 0xa34   : > { %3081 = vmatmul.mubr.msk.f32.vlgmr.msra.gmra.mrb[8].mxu0 %vm398_vm3, %v2567_v46 }
 0xa36   : > { %v2841_v48 = vpop.permute.xlu0 %2840 }
 0xa37   : > { %v2842_v53 = vsel %vm1970_vm6, %v2839_v50, %v2841_v48 }
 0xb07   : > { %v2822_v49 = vpop.f32.mrb[8].mxu0 }
 0xb08   : > { %v2834_v51 = vadd.f32 %v2832_v47, %v2822_v49  ;;  %v2824_v52 = vpop.f32.mrb[9].mxu0 }
 0xb09   : > { %v2835_v54 = vadd.f32 %v2832_v47, %v2824_v52 }
 0xb0a   : > { %v2845_v55 = vadd.f32 %v2842_v53, %v2834_v51 }
 0xb0b   : > { %v2846_v56 = vadd.f32 %v2841_v48, %v2835_v54 }
 0xb0c   : > { %2849 = vrot.lane.b32.xlu1 %v2845_v55, %s3553_s28 }
 0xb0d   : > { %2851 = vrot.lane.b32.xlu0 %v2846_v56, %s3553_s28 }
 0xb7e   : > { %v2850_v1 = vpop.permute.xlu1 %2849 }
 0xb7f   : > { %v2852_v57 = vpop.permute.xlu0 %2851 }
 0xb80   : > { %v2854_v58 = vsel %vm2853_vm2, %v2850_v1, %v2852_v57 }
 0xb81   : > { %2856 = vst [vmem:[%s339_s20] sm:$0xf] %v2854_v58 }
 0xb82   : > { %3449 = shalt.err (!%p3446_p4)
}
 0xb83   : > { %s3450_s17 = scalar_lea.hbm %s4085_s18, 64  ;;  %s3454_s0 = scalar_lea.hbm %s4140_s6, 128 }
 0xb84   : > { %p3451_p8 = scmp.ne.s32.totalorder %s4085_s18, %s3450_s17  ;;  %p3455_p10 = scmp.lt.u32.totalorder %s4085_s18, %s4140_s6 }
 0xb85   : > { %p3456_p13 = scmp.lt.u32.totalorder %s3454_s0, %s3450_s17  ;;  %p3458_p12 = scmp.lt.u32.totalorder %s3450_s17, %s4085_s18 }
 0xb86   : > { %p3452_p11 = pnand %p3451_p8, %p4165_p0 }
 0xb87   : > { %p3457_p3 = por %p3456_p13, %p3455_p10 }
 0xb88   : > { %p3453_p6 = pneg %p3452_p11 }
 0xb89   : > { %p3459_p5 = por %p3458_p12, %p3457_p3 }
 0xb8b   : > { %p3460_p9 = pnand %p3459_p5, %p3453_p6 }
 0xb8d   : > { %3463 = shalt.err (!%p3460_p9)
}
 0xb8e   : > { %3182 = dma.vmem_to_hbm [thread:$0]  (%p4165_p0), %s4087_s19, 64, %s4085_s18, %s2858_s4  }
 0xb8f PF: > { %s2884_s16 = sand.u32 1, %s3506_s21   ;;  %p4166_p1 = scmp.ne.s32.totalorder %s4149_s30, 0 }
 0xb90   : > { %p4167_p2 = scmp.ge.s32.totalorder %s3526_s26, 2  ;;  %s2885_s28 = scalar_lea.sflag [#allocation4], %s2884_s16 }
 0xb92   : > { %p3196_p7 = pnand %p4167_p2, %p4166_p1 }
 0xb94   : > { %3501 = dma.done.wait (!%p3196_p7), %s2885_s28, 64  }
 0xb95   : > { %3503 = vsyncadd (!%p3196_p7), %s2885_s28, 4294967232  ;;  %s25_s26 = sadd.s32 1, %s3526_s26   ;;  %s4168_s10 = sld [smem:[#allocation14_spill]] }
 0xb96   : > { %p22_p4 = scmp.ge.s32.totalorder %s25_s26, 4   ;;  %s4169_s29 = sld [smem:[#allocation13_spill]] }
 0xb97   : > { %s4170_s21 = smov %s3510_s22  ;;  %s4171_s22 = smov %s3514_s23 }
 0xb98   : > { %s4173_s24 = smov %s3522_s25  ;;  %24 = sbr.rel (!%p22_p4) target bundleno = 11 (0xb), region = 114 }
 0xb9b   : > { %s4172_s23 = smov %s4168_s10 }
 0xb9c   : > { %s4174_s25 = smov %s4169_s29 }
 0xb9f   :  { %2890 = vsyncpa [#allocation3], 1 }
 0xba0   :  { %2892 = vsyncpa [#allocation3 + $0x1], 1 }
 0xba1   :  { %2893 = vsyncpa [#allocation6], 1 }
 0xba2   :  { %2895 = vsyncpa [#allocation6 + $0x1], 1 }
 0xba3   :  { %2896 = vsyncpa [#allocation4], 1 }
 0xba4   :  { %2898 = vsyncpa [#allocation4 + $0x1], 1 }

</bundles_post_ra>
